<compile_context>
chip_gen: v6e
topology: v6e:2x2x1
jax: 0.10.0
libtpu: 0.0.40
codegen_flags: <defaults>
</compile_context>

<pallas_src>
import functools

import jax
import jax.numpy as jnp
from jax import lax
from jax.experimental import pallas as pl
from jax.experimental.pallas import tpu as pltpu


C_PAD = 128        # lane-dense padded class dimension (real target_size <= C_PAD)
NEG_BIG = -1e30    # padding logit bias: acts as -inf for softmax without inf-inf NaNs


def second_rnn_kernel(x_ref, wih_ref, whh_ref, blstm_ref, wf_ref, bf_ref, out_ref):
    """x_ref: (T, D) bf16; wih_ref: (D, 4H) bf16 (i/f/o cols pre-scaled by 0.5);
    whh_ref: (H, 4H) bf16 (i/f/o cols pre-scaled by 0.5); blstm_ref: (1, 4H) f32
    (b_ih + b_hh, i/f/o pre-scaled); wf_ref: (H, C_PAD) bf16 (W1 @ W2, zero-padded);
    bf_ref: (1, C_PAD) f32 (fused bias, padded lanes = NEG_BIG);
    out_ref: (T, C_PAD) f32 (valid log-probs in the first target_size lanes)."""
    T = x_ref.shape[0]
    H = whh_ref.shape[0]

    # Hoisted input projection, off the serial chain: one (T,D)x(D,4H) MXU pass.
    x_proj = (jnp.dot(x_ref[...], wih_ref[...], preferred_element_type=jnp.float32)
              + blstm_ref[...])                                        # (T, 4H) f32

    whh = whh_ref[...]                                                 # (H, 4H) bf16

    # LSTM recurrence, fully unrolled (T static & small); h/c live in vregs.
    h = jnp.zeros((1, H), jnp.float32)
    c = jnp.zeros((1, H), jnp.float32)
    hs = []
    for t in range(T):
        gates = (x_proj[t:t + 1, :]
                 + jnp.dot(h.astype(jnp.bfloat16), whh,
                           preferred_element_type=jnp.float32))        # (1, 4H) f32
        # Single wide tanh for all four gates. PyTorch order: i, f, g, o.
        # i/f/o inputs were pre-scaled by 0.5 offline, so
        #   sigmoid(z) = 0.5*(tanh(z/2)+1)  is recovered with cheap VPU affines,
        # while the g column keeps its scale for a plain tanh.
        t_all = jnp.tanh(gates)                                        # 1 EUP push
        t_if1 = t_all[:, 0:2 * H] + 1.0                                # (1, 2H): i,f slab
        i1 = t_if1[:, 0:H]
        f1 = t_if1[:, H:2 * H]
        g = t_all[:, 2 * H:3 * H]
        o1 = t_all[:, 3 * H:4 * H] + 1.0
        c = 0.5 * (f1 * c + i1 * g)            # = sigmoid(f)*c + sigmoid(i)*g
        h = (0.5 * o1) * jnp.tanh(c)           # = sigmoid(o)*tanh(c)
        hs.append(h)

    hs_mat = jnp.concatenate(hs, axis=0)                               # (T, H) f32

    # Fused (Linear -> Linear): one (T,H)x(H,C_PAD) matmul + bias, lane-dense N.
    tags = (jnp.dot(hs_mat.astype(jnp.bfloat16), wf_ref[...],
                    preferred_element_type=jnp.float32)
            + bf_ref[...])                                             # (T, C_PAD) f32

    # log_softmax along dim=1 (padded lanes carry -1e30 -> exp underflows to 0).
    m = jnp.max(tags, axis=-1, keepdims=True)
    z = tags - m
    lse = jnp.log(jnp.sum(jnp.exp(z), axis=-1, keepdims=True))
    out_ref[...] = z - lse


def prepare_params(params):
    """One-time weight preparation — keep OUT of the per-call path.
    Fuses the two Linear layers, pre-scales i/f/o gate columns by 0.5 (for the
    single-tanh gate trick), casts matmul weights to bf16, and lane-pads the
    class dimension to C_PAD."""
    H = params["whh_t"].shape[0]

    gate_scale = jnp.concatenate([
        jnp.full((1, 2 * H), 0.5, jnp.float32),   # i, f
        jnp.ones((1, H), jnp.float32),            # g
        jnp.full((1, H), 0.5, jnp.float32),       # o
    ], axis=1)

    wih = (params["wih_t"] * gate_scale).astype(jnp.bfloat16)          # (D, 4H)
    whh = (params["whh_t"] * gate_scale).astype(jnp.bfloat16)          # (H, 4H)
    b_lstm = (params["b_lstm"] * gate_scale).astype(jnp.float32)       # (1, 4H)

    w_fused = params["w1_t"] @ params["w2_t"]                          # (H, C) f32
    b_fused = params["b1"] @ params["w2_t"] + params["b2"]             # (1, C) f32
    C = w_fused.shape[1]
    wf = jnp.zeros((H, C_PAD), jnp.float32).at[:, :C].set(w_fused).astype(jnp.bfloat16)
    bf = jnp.full((1, C_PAD), NEG_BIG, jnp.float32).at[:, :C].set(b_fused)

    return {"wih": wih, "whh": whh, "b_lstm": b_lstm, "wf": wf, "bf": bf}


@functools.partial(jax.jit, static_argnames=("target_size",))
def second_rnn_forward(chars, prep, *, target_size):
    x = chars.astype(jnp.bfloat16)                                     # (T, D)
    T, D = x.shape
    H = prep["whh"].shape[0]

    full = lambda shape: pl.BlockSpec(shape, lambda i: (0,) * len(shape))

    out_pad = pl.pallas_call(
        second_rnn_kernel,
        out_shape=jax.ShapeDtypeStruct((T, C_PAD), jnp.float32),
        grid=(1,),
        in_specs=[
            full((T, D)),          # chars (bf16)
            full((D, 4 * H)),      # W_ih^T (bf16, gate-prescaled)
            full((H, 4 * H)),      # W_hh^T (bf16, gate-prescaled)
            full((1, 4 * H)),      # b_ih + b_hh (f32, gate-prescaled)
            full((H, C_PAD)),      # W1^T @ W2^T, zero-padded (bf16)
            full((1, C_PAD)),      # fused bias, padded lanes = NEG_BIG (f32)
        ],
        out_specs=full((T, C_PAD)),
        compiler_params=pltpu.CompilerParams(
            dimension_semantics=("arbitrary",)),
    )(x, prep["wih"], prep["whh"], prep["b_lstm"], prep["wf"], prep["bf"])

    return out_pad[:, :target_size]


def init_params(key, input_dim, hidden_dim, output_dim, target_size):
    """Deterministic synthetic init (uniform, PyTorch-like scale), stored f32."""
    ks = jax.random.split(key, 8)
    s_lstm = 1.0 / jnp.sqrt(hidden_dim)
    s_h1 = 1.0 / jnp.sqrt(hidden_dim)
    s_h2 = 1.0 / jnp.sqrt(output_dim)
    u = lambda k, shape, s: jax.random.uniform(k, shape, jnp.float32, -s, s)
    return {
        # stored transposed: (in_features, out_features)
        "wih_t": u(ks[0], (input_dim, 4 * hidden_dim), s_lstm),
        "whh_t": u(ks[1], (hidden_dim, 4 * hidden_dim), s_lstm),
        "b_lstm": u(ks[2], (1, 4 * hidden_dim), s_lstm)
                  + u(ks[3], (1, 4 * hidden_dim), s_lstm),   # b_ih + b_hh
        "w1_t": u(ks[4], (hidden_dim, output_dim), s_h1),
        "b1": u(ks[5], (1, output_dim), s_h1),
        "w2_t": u(ks[6], (output_dim, target_size), s_h2),
        "b2": u(ks[7], (1, target_size), s_h2),
    }


def reference_forward(chars, params, hidden_dim):
    """Pure-JAX reference (same math as the PyTorch module, unfused, f32)."""
    chars = chars.astype(jnp.float32)
    H = hidden_dim

    def step(carry, x_t):
        h, c = carry
        gates = (x_t[None, :] @ params["wih_t"] + h @ params["whh_t"]
                 + params["b_lstm"])
        i = jax.nn.sigmoid(gates[:, 0 * H:1 * H])
        f = jax.nn.sigmoid(gates[:, 1 * H:2 * H])
        g = jnp.tanh(gates[:, 2 * H:3 * H])
        o = jax.nn.sigmoid(gates[:, 3 * H:4 * H])
        c = f * c + i * g
        h = o * jnp.tanh(c)
        return (h, c), h[0]

    init = (jnp.zeros((1, H), jnp.float32), jnp.zeros((1, H), jnp.float32))
    _, hs = lax.scan(step, init, chars)
    hidden = hs @ params["w1_t"] + params["b1"]
    tags = hidden @ params["w2_t"] + params["b2"]
    return jax.nn.log_softmax(tags, axis=1)


if __name__ == "__main__":
    # Shapes consistent with the module defaults: chars is (length, input_dim)
    seq_len = 8
    input_dim = 300
    hidden_dim = 128
    output_dim = 64
    target_size = 22

    key = jax.random.PRNGKey(0)
    k_x, k_p = jax.random.split(key)
    chars = jax.random.normal(k_x, (seq_len, input_dim), jnp.float32)
    params = init_params(k_p, input_dim, hidden_dim, output_dim, target_size)

    # One-time weight preparation (kept out of the per-call path).
    prep = jax.tree_util.tree_map(jax.block_until_ready, prepare_params(params))

    out = jax.block_until_ready(
        second_rnn_forward(chars, prep, target_size=target_size))
    assert out.shape == (seq_len, target_size)
    assert out.dtype == jnp.float32

    # sanity: rows of log_softmax exponentiate and sum to 1
    row_sums = jnp.sum(jnp.exp(out), axis=1)
    assert bool(jnp.all(jnp.abs(row_sums - 1.0) < 1e-3))

    # compare against pure-JAX f32 reference (loose tol: bf16 weights + MXU precision)
    ref = jax.block_until_ready(reference_forward(chars, params, hidden_dim))
    assert bool(jnp.all(jnp.abs(out - ref) < 3e-2))

    print("KERNEL_OK")
</pallas_src>

<mosaic_0001>
module attributes {stable_mosaic.version = 11 : i64} {
  func.func @second_rnn_kernel(%arg0: i32, %arg1: memref<8x300xbf16, #tpu.memory_space<vmem>>, %arg2: memref<300x512xbf16, #tpu.memory_space<vmem>>, %arg3: memref<128x512xbf16, #tpu.memory_space<vmem>>, %arg4: memref<1x512xf32, #tpu.memory_space<vmem>>, %arg5: memref<128x128xbf16, #tpu.memory_space<vmem>>, %arg6: memref<1x128xf32, #tpu.memory_space<vmem>>, %arg7: memref<8x128xf32, #tpu.memory_space<vmem>>) attributes {dimension_semantics = [#tpu.dimension_semantics<arbitrary>], iteration_bounds = array<i64: 1>, scalar_prefetch = 0 : i64, scratch_operands = 0 : i64, tpu.core_type = #tpu.core_type<tc>, window_params = [{pipeline_mode = #tpu.pipeline_mode<synchronous>, transform_indices = @transform_0, window_bounds = array<i64: 8, 300>}, {pipeline_mode = #tpu.pipeline_mode<synchronous>, transform_indices = @transform_1, window_bounds = array<i64: 300, 512>}, {pipeline_mode = #tpu.pipeline_mode<synchronous>, transform_indices = @transform_2, window_bounds = array<i64: 128, 512>}, {pipeline_mode = #tpu.pipeline_mode<synchronous>, transform_indices = @transform_3, window_bounds = array<i64: 1, 512>}, {pipeline_mode = #tpu.pipeline_mode<synchronous>, transform_indices = @transform_4, window_bounds = array<i64: 128, 128>}, {pipeline_mode = #tpu.pipeline_mode<synchronous>, transform_indices = @transform_5, window_bounds = array<i64: 1, 128>}, {pipeline_mode = #tpu.pipeline_mode<synchronous>, transform_indices = @transform_6, window_bounds = array<i64: 8, 128>}]} {
    %c0 = arith.constant 0 : index
    %c0_0 = arith.constant 0 : index
    %0 = vector.load %arg1[%c0, %c0_0] : memref<8x300xbf16, #tpu.memory_space<vmem>>, vector<8x300xbf16>
    %c0_1 = arith.constant 0 : index
    %c0_2 = arith.constant 0 : index
    %1 = vector.load %arg2[%c0_1, %c0_2] : memref<300x512xbf16, #tpu.memory_space<vmem>>, vector<300x512xbf16>
    %cst = arith.constant dense<0.000000e+00> : vector<8x512xf32>
    %2 = tpu.matmul %0, %1, %cst {dimension_numbers = #tpu.dot_dimension_numbers<[1], [0], [0], [1], [0, 0, 1, 1], [], []>} : vector<8x300xbf16>, vector<300x512xbf16>, vector<8x512xf32> -> vector<8x512xf32>
    %c0_3 = arith.constant 0 : index
    %c0_4 = arith.constant 0 : index
    %3 = vector.load %arg4[%c0_3, %c0_4] : memref<1x512xf32, #tpu.memory_space<vmem>>, vector<1x512xf32>
    %4 = vector.broadcast %3 : vector<1x512xf32> to vector<8x512xf32>
    %5 = arith.addf %2, %4 : vector<8x512xf32>
    %c0_5 = arith.constant 0 : index
    %c0_6 = arith.constant 0 : index
    %6 = vector.load %arg3[%c0_5, %c0_6] : memref<128x512xbf16, #tpu.memory_space<vmem>>, vector<128x512xbf16>
    %cst_7 = arith.constant 0.000000e+00 : f32
    %7 = vector.broadcast %cst_7 : f32 to vector<1x128xf32>
    %cst_8 = arith.constant 0.000000e+00 : f32
    %8 = vector.broadcast %cst_8 : f32 to vector<1x128xf32>
    %9 = vector.extract_strided_slice %5 {offsets = [0, 0], sizes = [1, 512], strides = [1, 1]} : vector<8x512xf32> to vector<1x512xf32>
    %10 = arith.truncf %7 : vector<1x128xf32> to vector<1x128xbf16>
    %cst_9 = arith.constant dense<0.000000e+00> : vector<1x512xf32>
    %11 = tpu.matmul %10, %6, %cst_9 {dimension_numbers = #tpu.dot_dimension_numbers<[1], [0], [0], [1], [0, 0, 1, 1], [], []>} : vector<1x128xbf16>, vector<128x512xbf16>, vector<1x512xf32> -> vector<1x512xf32>
    %12 = arith.addf %9, %11 : vector<1x512xf32>
    %13 = math.tanh %12 : vector<1x512xf32>
    %14 = vector.extract_strided_slice %13 {offsets = [0, 0], sizes = [1, 256], strides = [1, 1]} : vector<1x512xf32> to vector<1x256xf32>
    %cst_10 = arith.constant 1.000000e+00 : f32
    %15 = vector.broadcast %cst_10 : f32 to vector<1x256xf32>
    %16 = arith.addf %14, %15 : vector<1x256xf32>
    %17 = vector.extract_strided_slice %16 {offsets = [0, 0], sizes = [1, 128], strides = [1, 1]} : vector<1x256xf32> to vector<1x128xf32>
    %18 = vector.extract_strided_slice %16 {offsets = [0, 128], sizes = [1, 128], strides = [1, 1]} : vector<1x256xf32> to vector<1x128xf32>
    %19 = vector.extract_strided_slice %13 {offsets = [0, 256], sizes = [1, 128], strides = [1, 1]} : vector<1x512xf32> to vector<1x128xf32>
    %20 = vector.extract_strided_slice %13 {offsets = [0, 384], sizes = [1, 128], strides = [1, 1]} : vector<1x512xf32> to vector<1x128xf32>
    %cst_11 = arith.constant 1.000000e+00 : f32
    %21 = vector.broadcast %cst_11 : f32 to vector<1x128xf32>
    %22 = arith.addf %20, %21 : vector<1x128xf32>
    %23 = arith.mulf %18, %8 : vector<1x128xf32>
    %24 = arith.mulf %17, %19 : vector<1x128xf32>
    %25 = arith.addf %23, %24 : vector<1x128xf32>
    %cst_12 = arith.constant 5.000000e-01 : f32
    %26 = vector.broadcast %cst_12 : f32 to vector<1x128xf32>
    %27 = arith.mulf %26, %25 : vector<1x128xf32>
    %cst_13 = arith.constant 5.000000e-01 : f32
    %28 = vector.broadcast %cst_13 : f32 to vector<1x128xf32>
    %29 = arith.mulf %28, %22 : vector<1x128xf32>
    %30 = math.tanh %27 : vector<1x128xf32>
    %31 = arith.mulf %29, %30 : vector<1x128xf32>
    %32 = vector.extract_strided_slice %5 {offsets = [1, 0], sizes = [1, 512], strides = [1, 1]} : vector<8x512xf32> to vector<1x512xf32>
    %33 = arith.truncf %31 : vector<1x128xf32> to vector<1x128xbf16>
    %cst_14 = arith.constant dense<0.000000e+00> : vector<1x512xf32>
    %34 = tpu.matmul %33, %6, %cst_14 {dimension_numbers = #tpu.dot_dimension_numbers<[1], [0], [0], [1], [0, 0, 1, 1], [], []>} : vector<1x128xbf16>, vector<128x512xbf16>, vector<1x512xf32> -> vector<1x512xf32>
    %35 = arith.addf %32, %34 : vector<1x512xf32>
    %36 = math.tanh %35 : vector<1x512xf32>
    %37 = vector.extract_strided_slice %36 {offsets = [0, 0], sizes = [1, 256], strides = [1, 1]} : vector<1x512xf32> to vector<1x256xf32>
    %cst_15 = arith.constant 1.000000e+00 : f32
    %38 = vector.broadcast %cst_15 : f32 to vector<1x256xf32>
    %39 = arith.addf %37, %38 : vector<1x256xf32>
    %40 = vector.extract_strided_slice %39 {offsets = [0, 0], sizes = [1, 128], strides = [1, 1]} : vector<1x256xf32> to vector<1x128xf32>
    %41 = vector.extract_strided_slice %39 {offsets = [0, 128], sizes = [1, 128], strides = [1, 1]} : vector<1x256xf32> to vector<1x128xf32>
    %42 = vector.extract_strided_slice %36 {offsets = [0, 256], sizes = [1, 128], strides = [1, 1]} : vector<1x512xf32> to vector<1x128xf32>
    %43 = vector.extract_strided_slice %36 {offsets = [0, 384], sizes = [1, 128], strides = [1, 1]} : vector<1x512xf32> to vector<1x128xf32>
    %cst_16 = arith.constant 1.000000e+00 : f32
    %44 = vector.broadcast %cst_16 : f32 to vector<1x128xf32>
    %45 = arith.addf %43, %44 : vector<1x128xf32>
    %46 = arith.mulf %41, %27 : vector<1x128xf32>
    %47 = arith.mulf %40, %42 : vector<1x128xf32>
    %48 = arith.addf %46, %47 : vector<1x128xf32>
    %cst_17 = arith.constant 5.000000e-01 : f32
    %49 = vector.broadcast %cst_17 : f32 to vector<1x128xf32>
    %50 = arith.mulf %49, %48 : vector<1x128xf32>
    %cst_18 = arith.constant 5.000000e-01 : f32
    %51 = vector.broadcast %cst_18 : f32 to vector<1x128xf32>
    %52 = arith.mulf %51, %45 : vector<1x128xf32>
    %53 = math.tanh %50 : vector<1x128xf32>
    %54 = arith.mulf %52, %53 : vector<1x128xf32>
    %55 = vector.extract_strided_slice %5 {offsets = [2, 0], sizes = [1, 512], strides = [1, 1]} : vector<8x512xf32> to vector<1x512xf32>
    %56 = arith.truncf %54 : vector<1x128xf32> to vector<1x128xbf16>
    %cst_19 = arith.constant dense<0.000000e+00> : vector<1x512xf32>
    %57 = tpu.matmul %56, %6, %cst_19 {dimension_numbers = #tpu.dot_dimension_numbers<[1], [0], [0], [1], [0, 0, 1, 1], [], []>} : vector<1x128xbf16>, vector<128x512xbf16>, vector<1x512xf32> -> vector<1x512xf32>
    %58 = arith.addf %55, %57 : vector<1x512xf32>
    %59 = math.tanh %58 : vector<1x512xf32>
    %60 = vector.extract_strided_slice %59 {offsets = [0, 0], sizes = [1, 256], strides = [1, 1]} : vector<1x512xf32> to vector<1x256xf32>
    %cst_20 = arith.constant 1.000000e+00 : f32
    %61 = vector.broadcast %cst_20 : f32 to vector<1x256xf32>
    %62 = arith.addf %60, %61 : vector<1x256xf32>
    %63 = vector.extract_strided_slice %62 {offsets = [0, 0], sizes = [1, 128], strides = [1, 1]} : vector<1x256xf32> to vector<1x128xf32>
    %64 = vector.extract_strided_slice %62 {offsets = [0, 128], sizes = [1, 128], strides = [1, 1]} : vector<1x256xf32> to vector<1x128xf32>
    %65 = vector.extract_strided_slice %59 {offsets = [0, 256], sizes = [1, 128], strides = [1, 1]} : vector<1x512xf32> to vector<1x128xf32>
    %66 = vector.extract_strided_slice %59 {offsets = [0, 384], sizes = [1, 128], strides = [1, 1]} : vector<1x512xf32> to vector<1x128xf32>
    %cst_21 = arith.constant 1.000000e+00 : f32
    %67 = vector.broadcast %cst_21 : f32 to vector<1x128xf32>
    %68 = arith.addf %66, %67 : vector<1x128xf32>
    %69 = arith.mulf %64, %50 : vector<1x128xf32>
    %70 = arith.mulf %63, %65 : vector<1x128xf32>
    %71 = arith.addf %69, %70 : vector<1x128xf32>
    %cst_22 = arith.constant 5.000000e-01 : f32
    %72 = vector.broadcast %cst_22 : f32 to vector<1x128xf32>
    %73 = arith.mulf %72, %71 : vector<1x128xf32>
    %cst_23 = arith.constant 5.000000e-01 : f32
    %74 = vector.broadcast %cst_23 : f32 to vector<1x128xf32>
    %75 = arith.mulf %74, %68 : vector<1x128xf32>
    %76 = math.tanh %73 : vector<1x128xf32>
    %77 = arith.mulf %75, %76 : vector<1x128xf32>
    %78 = vector.extract_strided_slice %5 {offsets = [3, 0], sizes = [1, 512], strides = [1, 1]} : vector<8x512xf32> to vector<1x512xf32>
    %79 = arith.truncf %77 : vector<1x128xf32> to vector<1x128xbf16>
    %cst_24 = arith.constant dense<0.000000e+00> : vector<1x512xf32>
    %80 = tpu.matmul %79, %6, %cst_24 {dimension_numbers = #tpu.dot_dimension_numbers<[1], [0], [0], [1], [0, 0, 1, 1], [], []>} : vector<1x128xbf16>, vector<128x512xbf16>, vector<1x512xf32> -> vector<1x512xf32>
    %81 = arith.addf %78, %80 : vector<1x512xf32>
    %82 = math.tanh %81 : vector<1x512xf32>
    %83 = vector.extract_strided_slice %82 {offsets = [0, 0], sizes = [1, 256], strides = [1, 1]} : vector<1x512xf32> to vector<1x256xf32>
    %cst_25 = arith.constant 1.000000e+00 : f32
    %84 = vector.broadcast %cst_25 : f32 to vector<1x256xf32>
    %85 = arith.addf %83, %84 : vector<1x256xf32>
    %86 = vector.extract_strided_slice %85 {offsets = [0, 0], sizes = [1, 128], strides = [1, 1]} : vector<1x256xf32> to vector<1x128xf32>
    %87 = vector.extract_strided_slice %85 {offsets = [0, 128], sizes = [1, 128], strides = [1, 1]} : vector<1x256xf32> to vector<1x128xf32>
    %88 = vector.extract_strided_slice %82 {offsets = [0, 256], sizes = [1, 128], strides = [1, 1]} : vector<1x512xf32> to vector<1x128xf32>
    %89 = vector.extract_strided_slice %82 {offsets = [0, 384], sizes = [1, 128], strides = [1, 1]} : vector<1x512xf32> to vector<1x128xf32>
    %cst_26 = arith.constant 1.000000e+00 : f32
    %90 = vector.broadcast %cst_26 : f32 to vector<1x128xf32>
    %91 = arith.addf %89, %90 : vector<1x128xf32>
    %92 = arith.mulf %87, %73 : vector<1x128xf32>
    %93 = arith.mulf %86, %88 : vector<1x128xf32>
    %94 = arith.addf %92, %93 : vector<1x128xf32>
    %cst_27 = arith.constant 5.000000e-01 : f32
    %95 = vector.broadcast %cst_27 : f32 to vector<1x128xf32>
    %96 = arith.mulf %95, %94 : vector<1x128xf32>
    %cst_28 = arith.constant 5.000000e-01 : f32
    %97 = vector.broadcast %cst_28 : f32 to vector<1x128xf32>
    %98 = arith.mulf %97, %91 : vector<1x128xf32>
    %99 = math.tanh %96 : vector<1x128xf32>
    %100 = arith.mulf %98, %99 : vector<1x128xf32>
    %101 = vector.extract_strided_slice %5 {offsets = [4, 0], sizes = [1, 512], strides = [1, 1]} : vector<8x512xf32> to vector<1x512xf32>
    %102 = arith.truncf %100 : vector<1x128xf32> to vector<1x128xbf16>
    %cst_29 = arith.constant dense<0.000000e+00> : vector<1x512xf32>
    %103 = tpu.matmul %102, %6, %cst_29 {dimension_numbers = #tpu.dot_dimension_numbers<[1], [0], [0], [1], [0, 0, 1, 1], [], []>} : vector<1x128xbf16>, vector<128x512xbf16>, vector<1x512xf32> -> vector<1x512xf32>
    %104 = arith.addf %101, %103 : vector<1x512xf32>
    %105 = math.tanh %104 : vector<1x512xf32>
    %106 = vector.extract_strided_slice %105 {offsets = [0, 0], sizes = [1, 256], strides = [1, 1]} : vector<1x512xf32> to vector<1x256xf32>
    %cst_30 = arith.constant 1.000000e+00 : f32
    %107 = vector.broadcast %cst_30 : f32 to vector<1x256xf32>
    %108 = arith.addf %106, %107 : vector<1x256xf32>
    %109 = vector.extract_strided_slice %108 {offsets = [0, 0], sizes = [1, 128], strides = [1, 1]} : vector<1x256xf32> to vector<1x128xf32>
    %110 = vector.extract_strided_slice %108 {offsets = [0, 128], sizes = [1, 128], strides = [1, 1]} : vector<1x256xf32> to vector<1x128xf32>
    %111 = vector.extract_strided_slice %105 {offsets = [0, 256], sizes = [1, 128], strides = [1, 1]} : vector<1x512xf32> to vector<1x128xf32>
    %112 = vector.extract_strided_slice %105 {offsets = [0, 384], sizes = [1, 128], strides = [1, 1]} : vector<1x512xf32> to vector<1x128xf32>
    %cst_31 = arith.constant 1.000000e+00 : f32
    %113 = vector.broadcast %cst_31 : f32 to vector<1x128xf32>
    %114 = arith.addf %112, %113 : vector<1x128xf32>
    %115 = arith.mulf %110, %96 : vector<1x128xf32>
    %116 = arith.mulf %109, %111 : vector<1x128xf32>
    %117 = arith.addf %115, %116 : vector<1x128xf32>
    %cst_32 = arith.constant 5.000000e-01 : f32
    %118 = vector.broadcast %cst_32 : f32 to vector<1x128xf32>
    %119 = arith.mulf %118, %117 : vector<1x128xf32>
    %cst_33 = arith.constant 5.000000e-01 : f32
    %120 = vector.broadcast %cst_33 : f32 to vector<1x128xf32>
    %121 = arith.mulf %120, %114 : vector<1x128xf32>
    %122 = math.tanh %119 : vector<1x128xf32>
    %123 = arith.mulf %121, %122 : vector<1x128xf32>
    %124 = vector.extract_strided_slice %5 {offsets = [5, 0], sizes = [1, 512], strides = [1, 1]} : vector<8x512xf32> to vector<1x512xf32>
    %125 = arith.truncf %123 : vector<1x128xf32> to vector<1x128xbf16>
    %cst_34 = arith.constant dense<0.000000e+00> : vector<1x512xf32>
    %126 = tpu.matmul %125, %6, %cst_34 {dimension_numbers = #tpu.dot_dimension_numbers<[1], [0], [0], [1], [0, 0, 1, 1], [], []>} : vector<1x128xbf16>, vector<128x512xbf16>, vector<1x512xf32> -> vector<1x512xf32>
    %127 = arith.addf %124, %126 : vector<1x512xf32>
    %128 = math.tanh %127 : vector<1x512xf32>
    %129 = vector.extract_strided_slice %128 {offsets = [0, 0], sizes = [1, 256], strides = [1, 1]} : vector<1x512xf32> to vector<1x256xf32>
    %cst_35 = arith.constant 1.000000e+00 : f32
    %130 = vector.broadcast %cst_35 : f32 to vector<1x256xf32>
    %131 = arith.addf %129, %130 : vector<1x256xf32>
    %132 = vector.extract_strided_slice %131 {offsets = [0, 0], sizes = [1, 128], strides = [1, 1]} : vector<1x256xf32> to vector<1x128xf32>
    %133 = vector.extract_strided_slice %131 {offsets = [0, 128], sizes = [1, 128], strides = [1, 1]} : vector<1x256xf32> to vector<1x128xf32>
    %134 = vector.extract_strided_slice %128 {offsets = [0, 256], sizes = [1, 128], strides = [1, 1]} : vector<1x512xf32> to vector<1x128xf32>
    %135 = vector.extract_strided_slice %128 {offsets = [0, 384], sizes = [1, 128], strides = [1, 1]} : vector<1x512xf32> to vector<1x128xf32>
    %cst_36 = arith.constant 1.000000e+00 : f32
    %136 = vector.broadcast %cst_36 : f32 to vector<1x128xf32>
    %137 = arith.addf %135, %136 : vector<1x128xf32>
    %138 = arith.mulf %133, %119 : vector<1x128xf32>
    %139 = arith.mulf %132, %134 : vector<1x128xf32>
    %140 = arith.addf %138, %139 : vector<1x128xf32>
    %cst_37 = arith.constant 5.000000e-01 : f32
    %141 = vector.broadcast %cst_37 : f32 to vector<1x128xf32>
    %142 = arith.mulf %141, %140 : vector<1x128xf32>
    %cst_38 = arith.constant 5.000000e-01 : f32
    %143 = vector.broadcast %cst_38 : f32 to vector<1x128xf32>
    %144 = arith.mulf %143, %137 : vector<1x128xf32>
    %145 = math.tanh %142 : vector<1x128xf32>
    %146 = arith.mulf %144, %145 : vector<1x128xf32>
    %147 = vector.extract_strided_slice %5 {offsets = [6, 0], sizes = [1, 512], strides = [1, 1]} : vector<8x512xf32> to vector<1x512xf32>
    %148 = arith.truncf %146 : vector<1x128xf32> to vector<1x128xbf16>
    %cst_39 = arith.constant dense<0.000000e+00> : vector<1x512xf32>
    %149 = tpu.matmul %148, %6, %cst_39 {dimension_numbers = #tpu.dot_dimension_numbers<[1], [0], [0], [1], [0, 0, 1, 1], [], []>} : vector<1x128xbf16>, vector<128x512xbf16>, vector<1x512xf32> -> vector<1x512xf32>
    %150 = arith.addf %147, %149 : vector<1x512xf32>
    %151 = math.tanh %150 : vector<1x512xf32>
    %152 = vector.extract_strided_slice %151 {offsets = [0, 0], sizes = [1, 256], strides = [1, 1]} : vector<1x512xf32> to vector<1x256xf32>
    %cst_40 = arith.constant 1.000000e+00 : f32
    %153 = vector.broadcast %cst_40 : f32 to vector<1x256xf32>
    %154 = arith.addf %152, %153 : vector<1x256xf32>
    %155 = vector.extract_strided_slice %154 {offsets = [0, 0], sizes = [1, 128], strides = [1, 1]} : vector<1x256xf32> to vector<1x128xf32>
    %156 = vector.extract_strided_slice %154 {offsets = [0, 128], sizes = [1, 128], strides = [1, 1]} : vector<1x256xf32> to vector<1x128xf32>
    %157 = vector.extract_strided_slice %151 {offsets = [0, 256], sizes = [1, 128], strides = [1, 1]} : vector<1x512xf32> to vector<1x128xf32>
    %158 = vector.extract_strided_slice %151 {offsets = [0, 384], sizes = [1, 128], strides = [1, 1]} : vector<1x512xf32> to vector<1x128xf32>
    %cst_41 = arith.constant 1.000000e+00 : f32
    %159 = vector.broadcast %cst_41 : f32 to vector<1x128xf32>
    %160 = arith.addf %158, %159 : vector<1x128xf32>
    %161 = arith.mulf %156, %142 : vector<1x128xf32>
    %162 = arith.mulf %155, %157 : vector<1x128xf32>
    %163 = arith.addf %161, %162 : vector<1x128xf32>
    %cst_42 = arith.constant 5.000000e-01 : f32
    %164 = vector.broadcast %cst_42 : f32 to vector<1x128xf32>
    %165 = arith.mulf %164, %163 : vector<1x128xf32>
    %cst_43 = arith.constant 5.000000e-01 : f32
    %166 = vector.broadcast %cst_43 : f32 to vector<1x128xf32>
    %167 = arith.mulf %166, %160 : vector<1x128xf32>
    %168 = math.tanh %165 : vector<1x128xf32>
    %169 = arith.mulf %167, %168 : vector<1x128xf32>
    %170 = vector.extract_strided_slice %5 {offsets = [7, 0], sizes = [1, 512], strides = [1, 1]} : vector<8x512xf32> to vector<1x512xf32>
    %171 = arith.truncf %169 : vector<1x128xf32> to vector<1x128xbf16>
    %cst_44 = arith.constant dense<0.000000e+00> : vector<1x512xf32>
    %172 = tpu.matmul %171, %6, %cst_44 {dimension_numbers = #tpu.dot_dimension_numbers<[1], [0], [0], [1], [0, 0, 1, 1], [], []>} : vector<1x128xbf16>, vector<128x512xbf16>, vector<1x512xf32> -> vector<1x512xf32>
    %173 = arith.addf %170, %172 : vector<1x512xf32>
    %174 = math.tanh %173 : vector<1x512xf32>
    %175 = vector.extract_strided_slice %174 {offsets = [0, 0], sizes = [1, 256], strides = [1, 1]} : vector<1x512xf32> to vector<1x256xf32>
    %cst_45 = arith.constant 1.000000e+00 : f32
    %176 = vector.broadcast %cst_45 : f32 to vector<1x256xf32>
    %177 = arith.addf %175, %176 : vector<1x256xf32>
    %178 = vector.extract_strided_slice %177 {offsets = [0, 0], sizes = [1, 128], strides = [1, 1]} : vector<1x256xf32> to vector<1x128xf32>
    %179 = vector.extract_strided_slice %177 {offsets = [0, 128], sizes = [1, 128], strides = [1, 1]} : vector<1x256xf32> to vector<1x128xf32>
    %180 = vector.extract_strided_slice %174 {offsets = [0, 256], sizes = [1, 128], strides = [1, 1]} : vector<1x512xf32> to vector<1x128xf32>
    %181 = vector.extract_strided_slice %174 {offsets = [0, 384], sizes = [1, 128], strides = [1, 1]} : vector<1x512xf32> to vector<1x128xf32>
    %cst_46 = arith.constant 1.000000e+00 : f32
    %182 = vector.broadcast %cst_46 : f32 to vector<1x128xf32>
    %183 = arith.addf %181, %182 : vector<1x128xf32>
    %184 = arith.mulf %179, %165 : vector<1x128xf32>
    %185 = arith.mulf %178, %180 : vector<1x128xf32>
    %186 = arith.addf %184, %185 : vector<1x128xf32>
    %cst_47 = arith.constant 5.000000e-01 : f32
    %187 = vector.broadcast %cst_47 : f32 to vector<1x128xf32>
    %188 = arith.mulf %187, %186 : vector<1x128xf32>
    %cst_48 = arith.constant 5.000000e-01 : f32
    %189 = vector.broadcast %cst_48 : f32 to vector<1x128xf32>
    %190 = arith.mulf %189, %183 : vector<1x128xf32>
    %191 = math.tanh %188 : vector<1x128xf32>
    %192 = arith.mulf %190, %191 : vector<1x128xf32>
    %193 = tpu.concatenate %31, %54, %77, %100, %123, %146, %169, %192 in 0 : vector<1x128xf32>, vector<1x128xf32>, vector<1x128xf32>, vector<1x128xf32>, vector<1x128xf32>, vector<1x128xf32>, vector<1x128xf32>, vector<1x128xf32> -> vector<8x128xf32>
    %194 = arith.truncf %193 : vector<8x128xf32> to vector<8x128xbf16>
    %c0_49 = arith.constant 0 : index
    %c0_50 = arith.constant 0 : index
    %195 = vector.load %arg5[%c0_49, %c0_50] : memref<128x128xbf16, #tpu.memory_space<vmem>>, vector<128x128xbf16>
    %cst_51 = arith.constant dense<0.000000e+00> : vector<8x128xf32>
    %196 = tpu.matmul %194, %195, %cst_51 {dimension_numbers = #tpu.dot_dimension_numbers<[1], [0], [0], [1], [0, 0, 1, 1], [], []>} : vector<8x128xbf16>, vector<128x128xbf16>, vector<8x128xf32> -> vector<8x128xf32>
    %c0_52 = arith.constant 0 : index
    %c0_53 = arith.constant 0 : index
    %197 = vector.load %arg6[%c0_52, %c0_53] : memref<1x128xf32, #tpu.memory_space<vmem>>, vector<1x128xf32>
    %198 = vector.broadcast %197 : vector<1x128xf32> to vector<8x128xf32>
    %199 = arith.addf %196, %198 : vector<8x128xf32>
    %cst_54 = arith.constant dense<0xFF800000> : vector<8xf32>
    %200 = vector.multi_reduction <maximumf>, %199, %cst_54 [1] : vector<8x128xf32> to vector<8xf32>
    %201 = vector.shape_cast %200 : vector<8xf32> to vector<8x1xf32>
    %202 = vector.broadcast %201 : vector<8x1xf32> to vector<8x128xf32>
    %203 = arith.subf %199, %202 : vector<8x128xf32>
    %204 = math.exp %203 : vector<8x128xf32>
    %cst_55 = arith.constant dense<0.000000e+00> : vector<8xf32>
    %205 = vector.multi_reduction <add>, %204, %cst_55 [1] : vector<8x128xf32> to vector<8xf32>
    %206 = vector.shape_cast %205 : vector<8xf32> to vector<8x1xf32>
    %207 = math.log %206 : vector<8x1xf32>
    %208 = vector.broadcast %207 : vector<8x1xf32> to vector<8x128xf32>
    %209 = arith.subf %203, %208 : vector<8x128xf32>
    %c0_56 = arith.constant 0 : index
    %c0_57 = arith.constant 0 : index
    %210 = vector.load %arg7[%c0_56, %c0_57] : memref<8x128xf32, #tpu.memory_space<vmem>>, vector<8x128xf32>
    tpu.vector_store %arg7[%c0_56, %c0_57], %209 {strides = array<i32>} : memref<8x128xf32, #tpu.memory_space<vmem>>, vector<8x128xf32>,
    return
  }
  func.func @transform_0(%arg0: i32) -> (i32, i32) {
    %c0_i32 = arith.constant 0 : i32
    %c0_i32_0 = arith.constant 0 : i32
    %c0_i32_1 = arith.constant 0 : i32
    return %c0_i32, %c0_i32_0 : i32, i32
  }
  func.func @transform_1(%arg0: i32) -> (i32, i32) {
    %c0_i32 = arith.constant 0 : i32
    %c0_i32_0 = arith.constant 0 : i32
    %c0_i32_1 = arith.constant 0 : i32
    return %c0_i32, %c0_i32_0 : i32, i32
  }
  func.func @transform_2(%arg0: i32) -> (i32, i32) {
    %c0_i32 = arith.constant 0 : i32
    %c0_i32_0 = arith.constant 0 : i32
    %c0_i32_1 = arith.constant 0 : i32
    return %c0_i32, %c0_i32_0 : i32, i32
  }
  func.func @transform_3(%arg0: i32) -> (i32, i32) {
    %c0_i32 = arith.constant 0 : i32
    %c0_i32_0 = arith.constant 0 : i32
    %c0_i32_1 = arith.constant 0 : i32
    return %c0_i32, %c0_i32_0 : i32, i32
  }
  func.func @transform_4(%arg0: i32) -> (i32, i32) {
    %c0_i32 = arith.constant 0 : i32
    %c0_i32_0 = arith.constant 0 : i32
    %c0_i32_1 = arith.constant 0 : i32
    return %c0_i32, %c0_i32_0 : i32, i32
  }
  func.func @transform_5(%arg0: i32) -> (i32, i32) {
    %c0_i32 = arith.constant 0 : i32
    %c0_i32_0 = arith.constant 0 : i32
    %c0_i32_1 = arith.constant 0 : i32
    return %c0_i32, %c0_i32_0 : i32, i32
  }
  func.func @transform_6(%arg0: i32) -> (i32, i32) {
    %c0_i32 = arith.constant 0 : i32
    %c0_i32_0 = arith.constant 0 : i32
    %c0_i32_1 = arith.constant 0 : i32
    return %c0_i32, %c0_i32_0 : i32, i32
  }
}

</mosaic_0001>

<bundles_post_ra>
// kernel: second_rnn_forward.1
= control target key start
LH: loop header
LB: loop body
LE: loop exit
PB: predicated region body
PF: predicated region fallthrough
CT: control target
= control target key end

     0   :  { %11 = vsyncpa [#allocation3], 0  ;;  %s3051_s0 = inlined_call_operand.vmem [shape: bf16[8,300], index: 0, kind: input, shape index: {}]   ;;  %s3052_s1 = inlined_call_operand.hbm [shape: bf16[300,512], index: 1, kind: input, shape index: {}]   ;;  %s3053_s2 = inlined_call_operand.hbm [shape: bf16[128,512], index: 2, kind: input, shape index: {}]   ;;  %s3054_s3 = inlined_call_operand.vmem [shape: f32[1,512], index: 3, kind: input, shape index: {}]   ;;  %s3055_s4 = inlined_call_operand.hbm [shape: bf16[128,128], index: 4, kind: input, shape index: {}]   ;;  %s3056_s5 = inlined_call_operand.vmem [shape: f32[1,128], index: 5, kind: input, shape index: {}]   ;;  %s3057_s6 = inlined_call_operand.hbm [shape: f32[8,128], index: 6, kind: output, shape index: {}]  }
   0x1   :  { %12 = vsyncpa [#allocation6], 0 }
   0x2   :  { %13 = vsyncpa [#allocation4], 0  ;;  %s2549_s21 = smov [#allocation5]   ;;  %s2550_s23 = smov [#allocation2]  }
   0x3   :  { %s33_s22 = sshll.u32 %s2549_s21, 4  ;;  %s21_s24 = sshll.u32 %s2550_s23, 4  ;;  %s34_s22 = int_to_ptr.vmem [resolvable:$true] %s33_s22  ;;  %s22_s24 = int_to_ptr.vmem [resolvable:$true] %s21_s24 }
   0x4   :  { %s2471_s25 = scalar_lea.vmem %s34_s22, 4096  ;;  %p2476_p1 = scmp.lt.s32.totalorder %s34_s22, %s34_s22 }
   0x5   :  { %p2472_p0 = scmp.ne.s32.totalorder %s34_s22, %s2471_s25  ;;  %p2477_p2 = scmp.lt.s32.totalorder %s2471_s25, %s2471_s25 }
   0x7   :  { %p2478_p3 = por %p2477_p2, %p2476_p1 }
   0x9   :  { %p2479_p4 = pnand %p2478_p3, %p2472_p0 }
   0xb   :  { %2482 = shalt.err (!%p2479_p4)
}
   0xc   :  { %s2551_s26 = smov 256   ;;  %s2552_s27 = smov 16  }
   0xd   :  { %39 = dma.hbm_to_vmem [thread:$0]  %s3053_s2, 4096, %s34_s22, [#allocation6], %s2551_s26, %s2551_s26, %s2552_s27  }
   0xe   :  { %s2491_s30 = scalar_lea.vmem %s22_s24, 9728  ;;  %p2496_p6 = scmp.lt.s32.totalorder %s22_s24, %s22_s24 }
   0xf   :  { %p2492_p5 = scmp.ne.s32.totalorder %s22_s24, %s2491_s30  ;;  %p2497_p7 = scmp.lt.s32.totalorder %s2491_s30, %s2491_s30 }
  0x11   :  { %p2498_p8 = por %p2497_p7, %p2496_p6 }
  0x13   :  { %p2499_p9 = pnand %p2498_p8, %p2492_p5 }
  0x15   :  { %2502 = shalt.err (!%p2499_p9)
}
  0x16   :  { %27 = dma.hbm_to_vmem [thread:$0]  %s3052_s1, 9728, %s22_s24, [#allocation3], %s2551_s26, %s2551_s26, %s2552_s27  }
  0x17   :  { %s2553_s9 = smov [#allocation7]  }
  0x18   :  { %s47_s10 = sshll.u32 %s2553_s9, 4  ;;  %s48_s10 = int_to_ptr.vmem [resolvable:$true] %s47_s10 }
  0x19   :  { %s2511_s11 = scalar_lea.vmem %s48_s10, 1024  ;;  %p2516_p11 = scmp.lt.s32.totalorder %s48_s10, %s48_s10 }
  0x1a   :  { %p2512_p10 = scmp.ne.s32.totalorder %s48_s10, %s2511_s11  ;;  %p2517_p12 = scmp.lt.s32.totalorder %s2511_s11, %s2511_s11 }
  0x1c   :  { %p2518_p13 = por %p2517_p12, %p2516_p11 }
  0x1e   :  { %p2519_p0 = pnand %p2518_p13, %p2512_p10 }
  0x20   :  { %2522 = shalt.err (!%p2519_p0)
}
  0x21   :  { %s2554_s2 = smov 64   ;;  %s2555_s12 = smov 4  }
  0x22   :  { %53 = dma.hbm_to_vmem [thread:$0]  %s3055_s4, 1024, %s48_s10, [#allocation6], %s2554_s2, %s2554_s2, %s2555_s12  }
  0x23   :  { %2543 = dma.done.wait [#allocation3], 9728  }
  0x24   :  { %2544 = vsyncadd [#allocation3], 4294957568 }
  0x25   :  { %2545 = dma.done.wait [#allocation6], 5120  }
  0x26   :  { %2546 = vsyncadd [#allocation6], 4294962176  ;;  %v2556_v0 = vmov 0   ;;  %v2176_v1 = vld [vmem:[#allocation2 + $0xe4] ss:$16 sps:$4 sm:$0xff]   ;;  %vm556_vm0 = vcmask 1045504  }
  0x27   :  { %642 = vmatprep.mubr.bf16.mxu1 %v2556_v0  ;;  %v2178_v2 = vld [vmem:[#allocation2 + $0x244] ss:$16 sps:$4 sm:$0x3f]   ;;  %569 = vmatprep.subr.bf16.mxu0 %v2176_v1  ;;  %v2180_v3 = vld [vmem:[#allocation2 + $0xe0] ss:$16 sps:$4 sm:$0xff]   ;;  %vm552_vm1 = vcmask 359424  }
  0x28   :  { %v2181_v4 = vld [vmem:[#allocation2 + $0x240] ss:$16 sps:$4 sm:$0x3f]   ;;  %2091 = vmatprep.subr.msk.bf16.mxu1 %vm556_vm0, %v2178_v2  ;;  %v2182_v5 = vld [vmem:[#allocation2 + $0xc4] ss:$16 sps:$4 sm:$0xff]   ;;  %570 = vmatpush1.bf16.msra.mxu0 %v2180_v3  ;;  %vm1860_vm2 = vcmask 1040384  }
  0x29   :  { %v558_v6 = vsel %vm556_vm0, %v2181_v4, 0  ;;  %v2184_v7 = vld [vmem:[#allocation2 + $0x224] ss:$16 sps:$4 sm:$0xff]   ;;  %v2186_v8 = vld [vmem:[#allocation2 + $0xc0] ss:$16 sps:$4 sm:$0xff]   ;;  %571 = vmatprep.subr.bf16.mxu0 %v2182_v5  ;;  %vm1862_vm3 = vcmask 1041408  }
  0x2a   :  { %621 = vmatpush1.bf16.msra.mxu1 %v558_v6  ;;  %v2187_v9 = vld [vmem:[#allocation2 + $0x220] ss:$16 sps:$4 sm:$0xff]   ;;  %v2188_v10 = vld [vmem:[#allocation2 + $0xa4] ss:$16 sps:$4 sm:$0xff]   ;;  %v2199_v15 = vld [vmem:[#allocation2 + $0xec] ss:$16 sps:$4 sm:$0xff]  }
  0x2b   :  { %622 = vmatprep.subr.bf16.mxu1 %v2184_v7  ;;  %v2190_v11 = vld [vmem:[#allocation2 + $0x204] ss:$16 sps:$4 sm:$0xff]   ;;  %v2192_v12 = vld [vmem:[#allocation2 + $0xa0] ss:$16 sps:$4 sm:$0xff]   ;;  %v2610_v16 = vld [vmem:[%s3051_s0 + $0x8] ss:$0 sps:$4 sm:$0xff]  }
  0x2c   :  { %572 = vmatpush1.bf16.msra.mxu0 %v2186_v8  ;;  %v2193_v13 = vld [vmem:[#allocation2 + $0x200] ss:$16 sps:$4 sm:$0xff]   ;;  %v2194_v14 = vld [vmem:[#allocation2 + $0x84] ss:$16 sps:$4 sm:$0xff]   ;;  %v2197_v18 = vld [vmem:[#allocation2 + $0xe8] ss:$16 sps:$4 sm:$0xff]  }
  0x2d   :  { %573 = vmatprep.subr.bf16.mxu0 %v2188_v10  ;;  %v2200_v17 = vld [vmem:[#allocation2 + $0x80] ss:$16 sps:$4 sm:$0xff]   ;;  %v2201_v19 = vld [vmem:[#allocation2 + $0x64] ss:$16 sps:$4 sm:$0xff]   ;;  %v2205_v20 = vld [vmem:[#allocation2 + $0xcc] ss:$16 sps:$4 sm:$0xff]  }
  0x2e   :  { %623 = vmatpush1.bf16.msra.mxu1 %v2187_v9  ;;  %v2203_v21 = vld [vmem:[#allocation2 + $0xc8] ss:$16 sps:$4 sm:$0xff]   ;;  %v2206_v22 = vld [vmem:[#allocation2 + $0x60] ss:$16 sps:$4 sm:$0xff]   ;;  %v2207_v23 = vld [vmem:[#allocation2 + $0x44] ss:$16 sps:$4 sm:$0xff]  }
  0x2f   :  { %624 = vmatprep.subr.bf16.mxu1 %v2190_v11  ;;  %v2211_v24 = vld [vmem:[#allocation2 + $0xac] ss:$16 sps:$4 sm:$0xff]   ;;  %v2212_v25 = vld [vmem:[#allocation2 + $0x40] ss:$16 sps:$4 sm:$0xff]   ;;  %v2209_v26 = vld [vmem:[#allocation2 + $0xa8] ss:$16 sps:$4 sm:$0xff]  }
  0x30   :  { %574 = vmatpush1.bf16.msra.mxu0 %v2192_v12  ;;  %v2213_v27 = vld [vmem:[#allocation2 + $0x24] ss:$16 sps:$4 sm:$0xff]   ;;  %v2217_v28 = vld [vmem:[#allocation2 + $0x8c] ss:$16 sps:$4 sm:$0xff]   ;;  %v2215_v29 = vld [vmem:[#allocation2 + $0x88] ss:$16 sps:$4 sm:$0xff]  }
  0x31   :  { %575 = vmatprep.subr.bf16.mxu0 %v2194_v14  ;;  %v2218_v30 = vld [vmem:[#allocation2 + $0x20] ss:$16 sps:$4 sm:$0xff]   ;;  %v2219_v31 = vld [vmem:[#allocation2 + $0x4] ss:$16 sps:$4 sm:$0xff]   ;;  %v2223_v32 = vld [vmem:[#allocation2 + $0x6c] ss:$16 sps:$4 sm:$0xff]  }
  0x32   :  { %625 = vmatpush1.bf16.msra.mxu1 %v2193_v13  ;;  %v2224_v33 = vld [vmem:[#allocation2] ss:$16 sps:$4 sm:$0xff]   ;;  %v2221_v34 = vld [vmem:[#allocation2 + $0x68] ss:$16 sps:$4 sm:$0xff]   ;;  %v2225_v35 = vld [vmem:[#allocation2 + $0x1e4] ss:$16 sps:$4 sm:$0xff]  }
  0x33   :  { %651 = vmatprep.subr.bf16.mxu1 %v2199_v15  ;;  %v2229_v36 = vld [vmem:[#allocation2 + $0x4c] ss:$16 sps:$4 sm:$0xff]   ;;  %v2227_v37 = vld [vmem:[#allocation2 + $0x48] ss:$16 sps:$4 sm:$0xff]   ;;  %v2230_v38 = vld [vmem:[#allocation2 + $0x1e0] ss:$16 sps:$4 sm:$0xff]  }
  0x34   :  { %576 = vmatpush1.bf16.msra.mxu0 %v2200_v17  ;;  %v2231_v39 = vld [vmem:[#allocation2 + $0x1c4] ss:$16 sps:$4 sm:$0xff]   ;;  %v2235_v40 = vld [vmem:[#allocation2 + $0x2c] ss:$16 sps:$4 sm:$0xff]   ;;  %v2236_v41 = vld [vmem:[#allocation2 + $0x1c0] ss:$16 sps:$4 sm:$0xff]  }
  0x35   :  { %2092 = vmatmul.mubr.msk.bf16.vlgmr.msra.gmra.mxu1 %vm552_vm1, %v2610_v16  ;;  %577 = vmatprep.subr.bf16.mxu0 %v2201_v19  ;;  %v2233_v42 = vld [vmem:[#allocation2 + $0x28] ss:$16 sps:$4 sm:$0xff]   ;;  %v2237_v43 = vld [vmem:[#allocation2 + $0x1a4] ss:$16 sps:$4 sm:$0xff]   ;;  %v2241_v44 = vld [vmem:[#allocation2 + $0xc] ss:$16 sps:$4 sm:$0xff]  }
  0x36   :  { %652 = vmatpush1.bf16.msra.mxu1 %v2197_v18  ;;  %v2239_v45 = vld [vmem:[#allocation2 + $0x8] ss:$16 sps:$4 sm:$0xff]   ;;  %v2242_v46 = vld [vmem:[#allocation2 + $0x1a0] ss:$16 sps:$4 sm:$0xff]   ;;  %v2243_v47 = vld [vmem:[#allocation2 + $0x184] ss:$16 sps:$4 sm:$0xff]  }
  0x37   :  { %653 = vmatprep.subr.bf16.mxu1 %v2205_v20  ;;  %v2247_v48 = vld [vmem:[#allocation2 + $0x1ec] ss:$16 sps:$4 sm:$0xff]   ;;  %v66_v49 = vld [vmem:[%s3051_s0] sm:$0xff]  ;;  %v2245_v50 = vld [vmem:[#allocation2 + $0x1e8] ss:$16 sps:$4 sm:$0xff]   ;;  %vm1864_vm4 = vcmask 1042432  }
  0x38   :  { %578 = vmatpush1.bf16.msra.mxu0 %v2206_v22  ;;  %v2248_v51 = vld [vmem:[#allocation2 + $0x180] ss:$16 sps:$4 sm:$0xff]   ;;  %v2013_v52 = vcombine.high %v66_v49, %v66_v49  ;;  %v2249_v53 = vld [vmem:[#allocation2 + $0x164] ss:$16 sps:$4 sm:$0xff]   ;;  %v2253_v54 = vld [vmem:[#allocation2 + $0x1cc] ss:$16 sps:$4 sm:$0xff]   ;;  %v2012_v8 = vcombine.low %v66_v49, %v66_v49 }
  0x39   :  { %579 = vmatprep.subr.bf16.mxu0 %v2207_v23  ;;  %v2251_v55 = vld [vmem:[#allocation2 + $0x1c8] ss:$16 sps:$4 sm:$0xff]   ;;  %v2254_v56 = vld [vmem:[#allocation2 + $0x160] ss:$16 sps:$4 sm:$0xff]   ;;  %v2255_v57 = vld [vmem:[#allocation2 + $0x144] ss:$16 sps:$4 sm:$0xff]  }
  0x3a   :  { %654 = vmatpush1.bf16.msra.mxu1 %v2203_v21  ;;  %601 = vmatprep.mubr.bf16.mxu0 %v2013_v52  ;;  %v2259_v58 = vld [vmem:[#allocation2 + $0x1ac] ss:$16 sps:$4 sm:$0xff]   ;;  %v2260_v59 = vld [vmem:[#allocation2 + $0x140] ss:$16 sps:$4 sm:$0xff]   ;;  %v2257_v60 = vld [vmem:[#allocation2 + $0x1a8] ss:$16 sps:$4 sm:$0xff]  }
  0x3b   :  { %655 = vmatprep.subr.bf16.mxu1 %v2211_v24  ;;  %683 = vmatprep.mubr.bf16.mxu1 %v2013_v52  ;;  %v2261_v61 = vld [vmem:[#allocation2 + $0x124] ss:$16 sps:$4 sm:$0xff]   ;;  %v2265_v62 = vld [vmem:[#allocation2 + $0x18c] ss:$16 sps:$4 sm:$0xff]   ;;  %v2263_v63 = vld [vmem:[#allocation2 + $0x188] ss:$16 sps:$4 sm:$0xff]  }
  0x3c   :  { %580 = vmatpush1.bf16.msra.mxu0 %v2212_v25  ;;  %v2266_v1 = vld [vmem:[#allocation2 + $0x120] ss:$16 sps:$4 sm:$0xff]   ;;  %v2267_v2 = vld [vmem:[#allocation2 + $0x104] ss:$16 sps:$4 sm:$0xff]   ;;  %v2271_v3 = vld [vmem:[#allocation2 + $0x16c] ss:$16 sps:$4 sm:$0xff]  }
  0x3d   :  { %581 = vmatprep.subr.bf16.mxu0 %v2213_v27  ;;  %v2272_v4 = vld [vmem:[#allocation2 + $0x100] ss:$16 sps:$4 sm:$0xff]   ;;  %v2269_v5 = vld [vmem:[#allocation2 + $0x168] ss:$16 sps:$4 sm:$0xff]   ;;  %v2617_v6 = vld [vmem:[#allocation5 + $0xe4] ss:$16 sps:$4 sm:$0xff]  }
  0x3e   :  { %656 = vmatpush1.bf16.msra.mxu1 %v2209_v26  ;;  %v2277_v7 = vld [vmem:[#allocation2 + $0x14c] ss:$16 sps:$4 sm:$0xff]   ;;  %v2275_v9 = vld [vmem:[#allocation2 + $0x148] ss:$16 sps:$4 sm:$0xff]   ;;  %v2619_v10 = vld [vmem:[#allocation5 + $0xe0] ss:$16 sps:$4 sm:$0xff]  }
  0x3f   :  { %657 = vmatprep.subr.bf16.mxu1 %v2217_v28  ;;  %v2622_v11 = vld [vmem:[#allocation5 + $0xc4] ss:$16 sps:$4 sm:$0xff]   ;;  %v2283_v12 = vld [vmem:[#allocation2 + $0x12c] ss:$16 sps:$4 sm:$0xff]   ;;  %v2281_v13 = vld [vmem:[#allocation2 + $0x128] ss:$16 sps:$4 sm:$0xff]  }
  0x40   :  { %582 = vmatpush1.bf16.msra.mxu0 %v2218_v30  ;;  %v2625_v14 = vld [vmem:[#allocation5 + $0xc0] ss:$16 sps:$4 sm:$0xff]   ;;  %v2629_v15 = vld [vmem:[#allocation5 + $0xa4] ss:$16 sps:$4 sm:$0xff]   ;;  %v2289_v17 = vld [vmem:[#allocation2 + $0x10c] ss:$16 sps:$4 sm:$0xff]  }
  0x41   :  { %583 = vmatprep.subr.bf16.mxu0 %v2219_v31  ;;  %v2287_v18 = vld [vmem:[#allocation2 + $0x108] ss:$16 sps:$4 sm:$0xff]   ;;  %v2631_v19 = vld [vmem:[#allocation5 + $0xa0] ss:$16 sps:$4 sm:$0xff]   ;;  %v2634_v21 = vld [vmem:[#allocation5 + $0x84] ss:$16 sps:$4 sm:$0xff]  }
  0x42   :  { %658 = vmatpush1.bf16.msra.mxu1 %v2215_v29  ;;  %v2293_v20 = vld [vmem:[#allocation2 + $0x24c] ss:$16 sps:$4 sm:$0x3f]   ;;  %v2297_v22 = vld [vmem:[#allocation2 + $0x248] ss:$16 sps:$4 sm:$0x3f]  }
  0x43   :  { %659 = vmatprep.subr.bf16.mxu1 %v2223_v32  ;;  %v2637_v23 = vld [vmem:[#allocation5 + $0x80] ss:$16 sps:$4 sm:$0xff]   ;;  %v2639_v24 = vld [vmem:[#allocation5 + $0x64] ss:$16 sps:$4 sm:$0xff]   ;;  %v564_v25 = vsel %vm556_vm0, %v2297_v22, 0  ;;  %vm1866_vm5 = vcmask 1043456  }
  0x44   :  { %584 = vmatpush1.bf16.msra.mxu0 %v2224_v33  ;;  %v2301_v26 = vld [vmem:[#allocation2 + $0x22c] ss:$16 sps:$4 sm:$0xff]   ;;  %v2646_v27 = vld [vmem:[#allocation5 + $0x60] ss:$16 sps:$4 sm:$0xff]   ;;  %v2299_v28 = vld [vmem:[#allocation2 + $0x228] ss:$16 sps:$4 sm:$0xff]  }
  0x45   :  { %585 = vmatprep.subr.bf16.mxu0 %v2225_v35  ;;  %v2649_v29 = vld [vmem:[#allocation5 + $0x44] ss:$16 sps:$4 sm:$0xff]   ;;  %v2307_v30 = vld [vmem:[#allocation2 + $0x20c] ss:$16 sps:$4 sm:$0xff]   ;;  %v2653_v31 = vld [vmem:[#allocation5 + $0x40] ss:$16 sps:$4 sm:$0xff]  }
  0x46   :  { %660 = vmatpush1.bf16.msra.mxu1 %v2221_v34  ;;  %v2305_v32 = vld [vmem:[#allocation2 + $0x208] ss:$16 sps:$4 sm:$0xff]   ;;  %v2656_v33 = vld [vmem:[#allocation5 + $0x24] ss:$16 sps:$4 sm:$0xff]   ;;  %v2658_v34 = vld [vmem:[#allocation5 + $0xec] ss:$16 sps:$4 sm:$0xff]  }
  0x47   :  { %661 = vmatprep.subr.bf16.mxu1 %v2229_v36  ;;  %v2661_v35 = vld [vmem:[#allocation5 + $0x20] ss:$16 sps:$4 sm:$0xff]   ;;  %v2664_v36 = vld [vmem:[#allocation5 + $0xe8] ss:$16 sps:$4 sm:$0xff]   ;;  %vm1868_vm6 = vcmask 1044480   ;;  %vm2558_vm7 = vmmov 0  }
  0x48   :  { %586 = vmatpush2.bf16.msra.mxu0 %v2230_v38  ;;  %v2669_v38 = vld [vmem:[#allocation5 + $0xcc] ss:$16 sps:$4 sm:$0xff]   ;;  %v2720_v49 = vld [vmem:[#allocation5 + $0x28] ss:$16 sps:$4 sm:$0xff]   ;;  %vm1871_vm8 = vcmask 1046528   ;;  %s2559_s19 = smov [#allocation8]  }
  0x49   :  { %587 = vmatprep.subr.bf16.mxu0 %v2231_v39  ;;  %v2674_v39 = vld [vmem:[#allocation5] ss:$16 sps:$4 sm:$0xff]   ;;  %s2002_s20 = sshll.u32 %s2559_s19, 4  ;;  %s2003_s20 = int_to_ptr.vmem [resolvable:$true] %s2002_s20 }
  0x4a   :  { %662 = vmatpush1.bf16.msra.mxu1 %v2227_v37  ;;  %v2666_v37 = vld [vmem:[#allocation5 + $0x4] ss:$16 sps:$4 sm:$0xff]   ;;  %p2528_p2 = scmp.lt.s32.totalorder %s2003_s20, %s2003_s20 }
  0x4b   :  { %663 = vmatprep.subr.bf16.mxu1 %v2235_v40  ;;  %v2678_v40 = vld [vmem:[#allocation5 + $0xc8] ss:$16 sps:$4 sm:$0xff]  }
  0x4c   :  { %588 = vmatpush2.bf16.msra.mxu0 %v2236_v41  ;;  %v2681_v41 = vld [vmem:[#allocation5 + $0xac] ss:$16 sps:$4 sm:$0xff]  }
  0x4d   :  { %589 = vmatprep.subr.bf16.mxu0 %v2237_v43  ;;  %v2696_v43 = vld [vmem:[#allocation5 + $0x88] ss:$16 sps:$4 sm:$0xff]  }
  0x4e   :  { %664 = vmatpush1.bf16.msra.mxu1 %v2233_v42  ;;  %v2690_v42 = vld [vmem:[#allocation5 + $0x8c] ss:$16 sps:$4 sm:$0xff]  }
  0x4f   :  { %665 = vmatprep.subr.bf16.mxu1 %v2241_v44  ;;  %v2700_v44 = vld [vmem:[#allocation5 + $0x6c] ss:$16 sps:$4 sm:$0xff]  }
  0x50   :  { %590 = vmatpush2.bf16.msra.mxu0 %v2242_v46  ;;  %v2708_v46 = vld [vmem:[#allocation5 + $0x4c] ss:$16 sps:$4 sm:$0xff]  }
  0x51   :  { %591 = vmatprep.subr.bf16.mxu0 %v2243_v47  ;;  %v2712_v47 = vld [vmem:[#allocation5 + $0x48] ss:$16 sps:$4 sm:$0xff]  }
  0x52   :  { %666 = vmatpush1.bf16.msra.mxu1 %v2239_v45  ;;  %v2704_v45 = vld [vmem:[#allocation5 + $0x68] ss:$16 sps:$4 sm:$0xff]  }
  0x53   :  { %667 = vmatprep.subr.bf16.mxu1 %v2247_v48  ;;  %v2716_v48 = vld [vmem:[#allocation5 + $0x2c] ss:$16 sps:$4 sm:$0xff]  }
  0x54   :  { %592 = vmatpush2.bf16.msra.mxu0 %v2248_v51  ;;  %v2728_v51 = vld [vmem:[#allocation5 + $0x8] ss:$16 sps:$4 sm:$0xff]  }
  0x55   :  { %593 = vmatprep.subr.bf16.mxu0 %v2249_v53 }
  0x56   :  { %668 = vmatpush2.bf16.msra.mxu1 %v2245_v50  ;;  %v2724_v50 = vld [vmem:[#allocation5 + $0xc] ss:$16 sps:$4 sm:$0xff]  }
  0x57   :  { %669 = vmatprep.subr.bf16.mxu1 %v2253_v54 }
  0x58   :  { %594 = vmatpush2.bf16.msra.mxu0 %v2254_v56 }
  0x59   :  { %595 = vmatprep.subr.bf16.mxu0 %v2255_v57 }
  0x5a   :  { %670 = vmatpush2.bf16.msra.mxu1 %v2251_v55 }
  0x5b   :  { %671 = vmatprep.subr.bf16.mxu1 %v2259_v58 }
  0x5c   :  { %596 = vmatpush2.bf16.msra.mxu0 %v2260_v59 }
  0x5d   :  { %597 = vmatprep.subr.bf16.mxu0 %v2261_v61 }
  0x5e   :  { %672 = vmatpush2.bf16.msra.mxu1 %v2257_v60 }
  0x5f   :  { %673 = vmatprep.subr.bf16.mxu1 %v2265_v62 }
  0x60   :  { %598 = vmatpush2.bf16.msra.mxu0 %v2266_v1 }
  0x61   :  { %599 = vmatprep.subr.bf16.mxu0 %v2267_v2 }
  0x62   :  { %674 = vmatpush2.bf16.msra.mxu1 %v2263_v63 }
  0x63   :  { %675 = vmatprep.subr.bf16.mxu1 %v2271_v3 }
  0x64   :  { %600 = vmatpush2.bf16.msra.mxu0 %v2272_v4  ;;  %v146_v4 = vlaneseq }
  0x65   :  { %925 = vmatprep.subr.bf16.mxu0 %v2617_v6 }
  0x66   :  { %676 = vmatpush2.bf16.msra.mxu1 %v2269_v5 }
  0x67   :  { %677 = vmatprep.subr.bf16.mxu1 %v2277_v7  ;;  %602 = vmatmul.mubr.bf16.vlgmr.msra.gmra.mxu0 %v2012_v8 }
  0x68   :  { %926 = vmatpush1.bf16.msra.mxu0 %v2619_v10  ;;  %957 = vmatprep.mubr.bf16.mxu0 %v2556_v0 }
  0x69   :  { %927 = vmatprep.subr.bf16.mxu0 %v2622_v11 }
  0x6a   :  { %678 = vmatpush2.bf16.msra.mxu1 %v2275_v9 }
  0x6b   :  { %679 = vmatprep.subr.bf16.mxu1 %v2283_v12 }
  0x6c   :  { %928 = vmatpush1.bf16.msra.mxu0 %v2625_v14 }
  0x6d   :  { %929 = vmatprep.subr.bf16.mxu0 %v2629_v15 }
  0x6e   :  { %680 = vmatpush2.bf16.msra.mxu1 %v2281_v13 }
  0x6f   :  { %681 = vmatprep.subr.bf16.mxu1 %v2289_v17 }
  0x70   :  { %930 = vmatpush1.bf16.msra.mxu0 %v2631_v19 }
  0x71   :  { %931 = vmatprep.subr.bf16.mxu0 %v2634_v21 }
  0x72   :  { %682 = vmatpush2.bf16.msra.mxu1 %v2287_v18 }
  0x73   :  { %2093 = vmatprep.subr.msk.bf16.mxu1 %vm556_vm0, %v2293_v20  ;;  %v144_v20 = vld [vmem:[%s3054_s3] sm:$0xf] }
  0x74   :  { %932 = vmatpush1.bf16.msra.mxu0 %v2637_v23 }
  0x75   :  { %684 = vmatmul.mubr.bf16.vlgmr.msra.gmra.mxu1 %v2012_v8  ;;  %933 = vmatprep.subr.bf16.mxu0 %v2639_v24  ;;  %v147_v8 = vshrl.u32 %v146_v4, 7 }
  0x76   :  { %703 = vmatpush1.bf16.msra.mxu1 %v564_v25  ;;  %724 = vmatprep.mubr.bf16.mxu1 %v2556_v0 }
  0x77   :  { %704 = vmatprep.subr.bf16.mxu1 %v2301_v26  ;;  %v152_v12 = vsub.s32 1, %v147_v8  ;;  %v148_v17 = vsub.s32 0, %v147_v8 }
  0x78   :  { %934 = vmatpush1.bf16.msra.mxu0 %v2646_v27 }
  0x79   :  { %935 = vmatprep.subr.bf16.mxu0 %v2649_v29  ;;  %v153_v22 = vrot.slane %v144_v20, %v152_v12  ;;  %v149_v25 = vrot.slane %v144_v20, %v148_v17 }
  0x7a   :  { %705 = vmatpush1.bf16.msra.mxu1 %v2299_v28 }
  0x7b   :  { %706 = vmatprep.subr.bf16.mxu1 %v2307_v30  ;;  %v156_v30 = vsub.s32 2, %v147_v8 }
  0x7c   :  { %936 = vmatpush1.bf16.msra.mxu0 %v2653_v31 }
  0x7d   :  { %937 = vmatprep.subr.bf16.mxu0 %v2656_v33 }
  0x7e   :  { %707 = vmatpush1.bf16.msra.mxu1 %v2305_v32 }
  0x7f   :  { %966 = vmatprep.subr.bf16.mxu1 %v2658_v34 }
  0x80   :  { %938 = vmatpush1.bf16.msra.mxu0 %v2661_v35 }
  0x81   :  { %2094 = vmatmul.mubr.msk.bf16.vlgmr.msra.gmra.mxu1 %vm552_vm1, %v2610_v16  ;;  %939 = vmatprep.subr.bf16.mxu0 %v2666_v37  ;;  %v2686_v16 = vld [vmem:[#allocation5 + $0xa8] ss:$16 sps:$4 sm:$0xff]  }
  0x82   :  { %967 = vmatpush1.bf16.msra.mxu1 %v2664_v36  ;;  %998 = vmatprep.mubr.bf16.mxu1 %v2556_v0 }
  0x83   :  { %968 = vmatprep.subr.bf16.mxu1 %v2669_v38 }
  0x84   :  { %940 = vmatpush1.bf16.msra.mxu0 %v2674_v39 }
  0x85   :  { %1026 = vmatprep.subr.bf16.mxu0 %v2617_v6 }
  0x86   :  { %969 = vmatpush1.bf16.msra.mxu1 %v2678_v40 }
  0x87   :  { %970 = vmatprep.subr.bf16.mxu1 %v2681_v41  ;;  %958 = vmatmul.mubr.bf16.vlgmr.msra.gmra.mxu0 %v2556_v0 }
  0x88   :  { %1027 = vmatpush1.bf16.msra.mxu0 %v2619_v10  ;;  %1058 = vmatprep.mubr.bf16.mxu0 %v2556_v0 }
  0x89   :  { %1028 = vmatprep.subr.bf16.mxu0 %v2622_v11 }
  0x8a   :  { %971 = vmatpush1.bf16.msra.mxu1 %v2686_v16 }
  0x8b   :  { %972 = vmatprep.subr.bf16.mxu1 %v2690_v42 }
  0x8c   :  { %1029 = vmatpush1.bf16.msra.mxu0 %v2625_v14 }
  0x8d   :  { %1030 = vmatprep.subr.bf16.mxu0 %v2629_v15 }
  0x8e   :  { %973 = vmatpush1.bf16.msra.mxu1 %v2696_v43 }
  0x8f   :  { %974 = vmatprep.subr.bf16.mxu1 %v2700_v44 }
  0x90   :  { %1031 = vmatpush1.bf16.msra.mxu0 %v2631_v19 }
  0x91   :  { %1032 = vmatprep.subr.bf16.mxu0 %v2634_v21 }
  0x92   :  { %975 = vmatpush1.bf16.msra.mxu1 %v2704_v45 }
  0x93   :  { %976 = vmatprep.subr.bf16.mxu1 %v2708_v46 }
  0x94   :  { %1033 = vmatpush1.bf16.msra.mxu0 %v2637_v23 }
  0x95   :  { %1034 = vmatprep.subr.bf16.mxu0 %v2639_v24 }
  0x96   :  { %977 = vmatpush1.bf16.msra.mxu1 %v2712_v47 }
  0x97   :  { %978 = vmatprep.subr.bf16.mxu1 %v2716_v48 }
  0x98   :  { %1035 = vmatpush1.bf16.msra.mxu0 %v2646_v27 }
  0x99   :  { %1036 = vmatprep.subr.bf16.mxu0 %v2649_v29 }
  0x9a   :  { %979 = vmatpush1.bf16.msra.mxu1 %v2720_v49 }
  0x9b   :  { %980 = vmatprep.subr.bf16.mxu1 %v2724_v50 }
  0x9c   :  { %1037 = vmatpush1.bf16.msra.mxu0 %v2653_v31 }
  0x9d   :  { %1038 = vmatprep.subr.bf16.mxu0 %v2656_v33 }
  0x9e   :  { %981 = vmatpush1.bf16.msra.mxu1 %v2728_v51 }
  0x9f   :  { %1067 = vmatprep.subr.bf16.mxu1 %v2658_v34 }
  0xa0   :  { %1039 = vmatpush1.bf16.msra.mxu0 %v2661_v35 }
  0xa1   :  { %999 = vmatmul.mubr.bf16.vlgmr.msra.gmra.mxu1 %v2556_v0  ;;  %1040 = vmatprep.subr.bf16.mxu0 %v2666_v37 }
  0xa2   :  { %1068 = vmatpush1.bf16.msra.mxu1 %v2664_v36  ;;  %1099 = vmatprep.mubr.bf16.mxu1 %v2556_v0 }
  0xa3   :  { %1069 = vmatprep.subr.bf16.mxu1 %v2669_v38 }
  0xa4   :  { %1041 = vmatpush1.bf16.msra.mxu0 %v2674_v39 }
  0xa5   :  { %1146 = vmatprep.subr.bf16.mxu0 %v2617_v6 }
  0xa6   :  { %1070 = vmatpush1.bf16.msra.mxu1 %v2678_v40 }
  0xa7   :  { %1071 = vmatprep.subr.bf16.mxu1 %v2681_v41 }
  0xaa   :  { %1072 = vmatpush1.bf16.msra.mxu1 %v2686_v16 }
  0xab   :  { %1073 = vmatprep.subr.bf16.mxu1 %v2690_v42 }
  0xae   :  { %1074 = vmatpush1.bf16.msra.mxu1 %v2696_v43 }
  0xaf   :  { %1075 = vmatprep.subr.bf16.mxu1 %v2700_v44 }
  0xb2   :  { %1076 = vmatpush1.bf16.msra.mxu1 %v2704_v45 }
  0xb3   :  { %1077 = vmatprep.subr.bf16.mxu1 %v2708_v46 }
  0xb6   :  { %1078 = vmatpush1.bf16.msra.mxu1 %v2712_v47 }
  0xb7   :  { %1079 = vmatprep.subr.bf16.mxu1 %v2716_v48 }
  0xba   :  { %1080 = vmatpush1.bf16.msra.mxu1 %v2720_v49 }
  0xbb   :  { %1081 = vmatprep.subr.bf16.mxu1 %v2724_v50 }
  0xbe   :  { %1082 = vmatpush1.bf16.msra.mxu1 %v2728_v51 }
  0xbf   :  { %1187 = vmatprep.subr.bf16.mxu1 %v2658_v34 }
  0xf5   :  { %v644_v52 = vpop.f32.mrf.mxu1 }
  0xf7   :  { %v646_v53 = vpop.f32.mrf.mxu1 }
  0xf9   :  { %v648_v54 = vpop.f32.mrf.mxu1 }
  0xfb   :  { %v649_v55 = vpop.f32.mrf.mxu1 }
  0xfc   :  { %v157_v55 = vrot.slane %v144_v20, %v156_v30 }
 0x127   :  { %v603_v56 = vpop.f32.mrf.mxu0 }
 0x128   :  { %v604_v28 = vadd.f32 %v603_v56, %v149_v25 }
 0x129   :  { %v605_v57 = vpop.f32.mrf.mxu0 }
 0x12a   :  { %v606_v26 = vadd.f32 %v605_v57, %v153_v22  ;;  %v2763_v54 = vadd.f32 %v644_v52, %v604_v28 }
 0x12b   :  { %v607_v58 = vpop.f32.mrf.mxu0 }
 0x12c   :  { %v2761_v32 = vadd.f32 %v646_v53, %v606_v26 }
 0x12d   :  { %v608_v59 = vpop.f32.mrf.mxu0 }
 0x135   :  { %v685_v60 = vpop.f32.mrf.mxu1 }
 0x137   :  { %v687_v61 = vpop.f32.mrf.mxu1 }
 0x139   :  { %v689_v62 = vpop.f32.mrf.mxu1 }
 0x13a   :  { %v686_v62 = vadd.f32 %v685_v60, %v157_v55 }
 0x13b   :  { %v690_v63 = vpop.f32.mrf.mxu1 }
 0x13c   :  { %v160_v63 = vsub.s32 3, %v147_v8 }
 0x141   :  { %v726_v1 = vpop.f32.mrf.mxu1 }
 0x143   :  { %v728_v2 = vpop.f32.mrf.mxu1 }
 0x145   :  { %v730_v3 = vpop.f32.mrf.mxu1 }
 0x146   :  { %v2767_v3 = vadd.f32 %v726_v1, %v686_v62 }
 0x147   :  { %v731_v5 = vpop.f32.mrf.mxu1  ;;  %v959_v7 = vpop.f32.mrf.mxu0 }
 0x148   :  { %v1007_v59 = vadd.f32 %v959_v7, %v2763_v54  ;;  %v161_v5 = vrot.slane %v144_v20, %v160_v63 }
 0x149   :  { %v961_v9 = vpop.f32.mrf.mxu0 }
 0x14a   :  { %v1008_v58 = vadd.f32 %v961_v9, %v2761_v32  ;;  %v688_v12 = vadd.f32 %v687_v61, %v161_v5 }
 0x14b   :  { %v963_v13 = vpop.f32.mrf.mxu0 }
 0x14c   :  { %2349 = vtanh.f32 %v1008_v58  ;;  %v2770_v13 = vadd.f32 %v728_v2, %v688_v12 }
 0x14d   :  { %v964_v18 = vpop.f32.mrf.mxu0  ;;  %2351 = vtanh.f32 %v1007_v59 }
 0x159   :  { %v2350_v9 = vpop.eup %2349 }
 0x15a   :  { %v2352_v60 = vpop.eup %2351  ;;  %v1016_v17 = vadd.f32 1.0, %v2350_v9 }
 0x15b   :  { %v1015_v8 = vadd.f32 1.0, %v2352_v60 }
 0x15c   :  { %v1018_v18 = vmul.f32 0.0, %v1016_v17 }
 0x161   :  { %v1000_v4 = vpop.f32.mrf.mxu1 }
 0x162   :  { %v1009_v57 = vadd.f32 %v1000_v4, %v2767_v3 }
 0x163   :  { %v1002_v56 = vpop.f32.mrf.mxu1 }
 0x164   :  { %2353 = vtanh.f32 %v1009_v57  ;;  %v1010_v7 = vadd.f32 %v1002_v56, %v2770_v13 }
 0x165   :  { %v1004_v53 = vpop.f32.mrf.mxu1 }
 0x166   :  { %2355 = vtanh.f32 %v1010_v7 }
 0x167   :  { %v1005_v52 = vpop.f32.mrf.mxu1 }
 0x171   :  { %v2354_v1 = vpop.eup %2353 }
 0x172   :  { %v1019_v22 = vmul.f32 %v2354_v1, %v1015_v8 }
 0x173   :  { %v2356_v20 = vpop.eup %2355 }
 0x174   :  { %v1020_v25 = vadd.f32 %v1019_v22, %v1018_v18  ;;  %v1017_v28 = vadd.f32 1.0, %v2356_v20 }
 0x176   :  { %v2773_v26 = vmul.f32 0.5, %v1020_v25  ;;  %v1022_v61 = vmul.f32 0.5, %v1017_v28 }
 0x178   :  { %2357 = vtanh.f32 %v2773_v26  ;;  %v1132_v20 = vrot.slane %v2773_v26, 7 }
 0x185   :  { %v2358_v2 = vpop.eup %2357 }
 0x186   :  { %v2776_v30 = vmul.f32 %v2358_v2, %v1022_v61 }
 0x188   :  { %v1025_v55 = vpack.c.bf16 %v2776_v30, %v2776_v30 }
 0x18a   :  { %1059 = vmatmul.mubr.bf16.vlgmr.msra.gmra.mxu0 %v1025_v55  ;;  %1100 = vmatmul.mubr.bf16.vlgmr.msra.gmra.mxu1 %v1025_v55 }
 0x18b   :  { %1147 = vmatpush1.bf16.msra.mxu0 %v2619_v10  ;;  %1188 = vmatpush1.bf16.msra.mxu1 %v2664_v36 }
 0x18c   :  { %1148 = vmatprep.subr.bf16.mxu0 %v2622_v11  ;;  %1189 = vmatprep.subr.bf16.mxu1 %v2669_v38 }
 0x18d   :  { %1178 = vmatprep.mubr.bf16.mxu0 %v2556_v0  ;;  %1219 = vmatprep.mubr.bf16.mxu1 %v2556_v0 }
 0x18f   :  { %1149 = vmatpush1.bf16.msra.mxu0 %v2625_v14  ;;  %1190 = vmatpush1.bf16.msra.mxu1 %v2678_v40 }
 0x190   :  { %1150 = vmatprep.subr.bf16.mxu0 %v2629_v15  ;;  %1191 = vmatprep.subr.bf16.mxu1 %v2681_v41 }
 0x193   :  { %1151 = vmatpush1.bf16.msra.mxu0 %v2631_v19  ;;  %1192 = vmatpush1.bf16.msra.mxu1 %v2686_v16 }
 0x194   :  { %1152 = vmatprep.subr.bf16.mxu0 %v2634_v21  ;;  %1193 = vmatprep.subr.bf16.mxu1 %v2690_v42 }
 0x197   :  { %1153 = vmatpush1.bf16.msra.mxu0 %v2637_v23  ;;  %1194 = vmatpush1.bf16.msra.mxu1 %v2696_v43 }
 0x198   :  { %1154 = vmatprep.subr.bf16.mxu0 %v2639_v24  ;;  %1195 = vmatprep.subr.bf16.mxu1 %v2700_v44 }
 0x19b   :  { %1155 = vmatpush1.bf16.msra.mxu0 %v2646_v27  ;;  %1196 = vmatpush1.bf16.msra.mxu1 %v2704_v45 }
 0x19c   :  { %1156 = vmatprep.subr.bf16.mxu0 %v2649_v29  ;;  %1197 = vmatprep.subr.bf16.mxu1 %v2708_v46 }
 0x19f   :  { %1157 = vmatpush1.bf16.msra.mxu0 %v2653_v31  ;;  %1198 = vmatpush1.bf16.msra.mxu1 %v2712_v47 }
 0x1a0   :  { %1158 = vmatprep.subr.bf16.mxu0 %v2656_v33  ;;  %1199 = vmatprep.subr.bf16.mxu1 %v2716_v48 }
 0x1a3   :  { %1159 = vmatpush1.bf16.msra.mxu0 %v2661_v35  ;;  %1200 = vmatpush1.bf16.msra.mxu1 %v2720_v49 }
 0x1a4   :  { %1160 = vmatprep.subr.bf16.mxu0 %v2666_v37  ;;  %1201 = vmatprep.subr.bf16.mxu1 %v2724_v50 }
 0x1a7   :  { %1161 = vmatpush1.bf16.msra.mxu0 %v2674_v39  ;;  %1202 = vmatpush1.bf16.msra.mxu1 %v2728_v51 }
 0x1a8   :  { %1265 = vmatprep.subr.bf16.mxu0 %v2617_v6  ;;  %1306 = vmatprep.subr.bf16.mxu1 %v2658_v34 }
 0x24a   :  { %v1060_v58 = vpop.f32.mrf.mxu0  ;;  %v1101_v59 = vpop.f32.mrf.mxu1 }
 0x24b   :  { %v1112_v62 = vrot.slane %v1060_v58, 7  ;;  %v1114_v63 = vrot.slane %v1101_v59, 7 }
 0x24c   :  { %v1062_v4 = vpop.f32.mrf.mxu0  ;;  %v1103_v57 = vpop.f32.mrf.mxu1 }
 0x24d   :  { %v1120_v56 = vadd.f32 %v1112_v62, %v2763_v54  ;;  %v1113_v5 = vrot.slane %v1062_v4, 7  ;;  %v1122_v12 = vadd.f32 %v1114_v63, %v2767_v3  ;;  %v1115_v17 = vrot.slane %v1103_v57, 7 }
 0x24e   :  { %v1064_v53 = vpop.f32.mrf.mxu0  ;;  %v1105_v52 = vpop.f32.mrf.mxu1 }
 0x24f   :  { %2359 = vtanh.f32 %v1120_v56  ;;  %v1121_v9 = vadd.f32 %v1113_v5, %v2761_v32  ;;  %v1123_v8 = vadd.f32 %v1115_v17, %v2770_v13 }
 0x250   :  { %v1065_v7 = vpop.f32.mrf.mxu0  ;;  %v1106_v60 = vpop.f32.mrf.mxu1 }
 0x251   :  { %2361 = vtanh.f32 %v1121_v9 }
 0x252   :  { %2363 = vtanh.f32 %v1122_v12 }
 0x253   :  { %2365 = vtanh.f32 %v1123_v8 }
 0x25c   :  { %v2360_v1 = vpop.eup %2359 }
 0x25d   :  { %v1128_v18 = vadd.f32 1.0, %v2360_v1 }
 0x25e   :  { %v2362_v22 = vpop.eup %2361 }
 0x25f   :  { %v1129_v25 = vadd.f32 1.0, %v2362_v22  ;;  %v2364_v28 = vpop.eup %2363 }
 0x260   :  { %v1135_v2 = vmul.f32 %v2364_v28, %v1128_v18  ;;  %v2366_v59 = vpop.eup %2365 }
 0x261   :  { %v1134_v61 = vmul.f32 %v1132_v20, %v1129_v25  ;;  %v1130_v62 = vadd.f32 1.0, %v2366_v59 }
 0x263   :  { %v1136_v55 = vadd.f32 %v1135_v2, %v1134_v61  ;;  %v1138_v63 = vmul.f32 0.5, %v1130_v62 }
 0x265   :  { %v2819_v58 = vmul.f32 0.5, %v1136_v55 }
 0x267   :  { %2367 = vtanh.f32 %v2819_v58 }
 0x274   :  { %v2368_v4 = vpop.eup %2367 }
 0x275   :  { %v2822_v57 = vmul.f32 %v2368_v4, %v1138_v63  ;;  %v1252_v63 = vrot.slane %v2819_v58, 7 }
 0x277   :  { %v1141_v56 = vpack.c.bf16 %v2822_v57, %v2822_v57 }
 0x279   :  { %v1143_v5 = vshrl.u32 %v1141_v56, 16 }
 0x27b   :  { %1179 = vmatmul.mubr.bf16.vlgmr.msra.gmra.mxu0 %v1143_v5  ;;  %1220 = vmatmul.mubr.bf16.vlgmr.msra.gmra.mxu1 %v1143_v5 }
 0x27c   :  { %1266 = vmatpush1.bf16.msra.mxu0 %v2619_v10  ;;  %1307 = vmatpush1.bf16.msra.mxu1 %v2664_v36 }
 0x27d   :  { %1267 = vmatprep.subr.bf16.mxu0 %v2622_v11  ;;  %1308 = vmatprep.subr.bf16.mxu1 %v2669_v38 }
 0x27e   :  { %1297 = vmatprep.mubr.bf16.mxu0 %v2556_v0  ;;  %1338 = vmatprep.mubr.bf16.mxu1 %v2556_v0 }
 0x280   :  { %1268 = vmatpush1.bf16.msra.mxu0 %v2625_v14  ;;  %1309 = vmatpush1.bf16.msra.mxu1 %v2678_v40 }
 0x281   :  { %1269 = vmatprep.subr.bf16.mxu0 %v2629_v15  ;;  %1310 = vmatprep.subr.bf16.mxu1 %v2681_v41 }
 0x284   :  { %1270 = vmatpush1.bf16.msra.mxu0 %v2631_v19  ;;  %1311 = vmatpush1.bf16.msra.mxu1 %v2686_v16 }
 0x285   :  { %1271 = vmatprep.subr.bf16.mxu0 %v2634_v21  ;;  %1312 = vmatprep.subr.bf16.mxu1 %v2690_v42 }
 0x288   :  { %1272 = vmatpush1.bf16.msra.mxu0 %v2637_v23  ;;  %1313 = vmatpush1.bf16.msra.mxu1 %v2696_v43 }
 0x289   :  { %1273 = vmatprep.subr.bf16.mxu0 %v2639_v24  ;;  %1314 = vmatprep.subr.bf16.mxu1 %v2700_v44 }
 0x28c   :  { %1274 = vmatpush1.bf16.msra.mxu0 %v2646_v27  ;;  %1315 = vmatpush1.bf16.msra.mxu1 %v2704_v45 }
 0x28d   :  { %1275 = vmatprep.subr.bf16.mxu0 %v2649_v29  ;;  %1316 = vmatprep.subr.bf16.mxu1 %v2708_v46 }
 0x290   :  { %1276 = vmatpush1.bf16.msra.mxu0 %v2653_v31  ;;  %1317 = vmatpush1.bf16.msra.mxu1 %v2712_v47 }
 0x291   :  { %1277 = vmatprep.subr.bf16.mxu0 %v2656_v33  ;;  %1318 = vmatprep.subr.bf16.mxu1 %v2716_v48 }
 0x294   :  { %1278 = vmatpush1.bf16.msra.mxu0 %v2661_v35  ;;  %1319 = vmatpush1.bf16.msra.mxu1 %v2720_v49 }
 0x295   :  { %1279 = vmatprep.subr.bf16.mxu0 %v2666_v37  ;;  %1320 = vmatprep.subr.bf16.mxu1 %v2724_v50 }
 0x298   :  { %1280 = vmatpush1.bf16.msra.mxu0 %v2674_v39  ;;  %1321 = vmatpush1.bf16.msra.mxu1 %v2728_v51 }
 0x299   :  { %1386 = vmatprep.subr.bf16.mxu0 %v2617_v6  ;;  %1427 = vmatprep.subr.bf16.mxu1 %v2658_v34 }
 0x33b   :  { %v1180_v26 = vpop.f32.mrf.mxu0  ;;  %v1221_v53 = vpop.f32.mrf.mxu1 }
 0x33c   :  { %v1232_v52 = vrot.slane %v1180_v26, 6  ;;  %v1234_v12 = vrot.slane %v1221_v53, 6 }
 0x33d   :  { %v1182_v9 = vpop.f32.mrf.mxu0  ;;  %v1223_v7 = vpop.f32.mrf.mxu1 }
 0x33e   :  { %v1240_v60 = vadd.f32 %v1232_v52, %v2763_v54  ;;  %v1233_v17 = vrot.slane %v1182_v9, 6  ;;  %v1242_v18 = vadd.f32 %v1234_v12, %v2767_v3  ;;  %v1235_v28 = vrot.slane %v1223_v7, 6 }
 0x33f   :  { %v1184_v8 = vpop.f32.mrf.mxu0  ;;  %v1225_v1 = vpop.f32.mrf.mxu1 }
 0x340   :  { %2369 = vtanh.f32 %v1240_v60  ;;  %v1241_v22 = vadd.f32 %v1233_v17, %v2761_v32  ;;  %v1243_v61 = vadd.f32 %v1235_v28, %v2770_v13  ;;  %v1861_v17 = vsel %vm1860_vm2, %v2776_v30, %v2822_v57 }
 0x341   :  { %v1185_v25 = vpop.f32.mrf.mxu0  ;;  %v1226_v20 = vpop.f32.mrf.mxu1 }
 0x342   :  { %2371 = vtanh.f32 %v1241_v22 }
 0x343   :  { %2373 = vtanh.f32 %v1242_v18 }
 0x344   :  { %2375 = vtanh.f32 %v1243_v61 }
 0x34d   :  { %v2370_v2 = vpop.eup %2369 }
 0x34e   :  { %v1248_v55 = vadd.f32 1.0, %v2370_v2 }
 0x34f   :  { %v2372_v59 = vpop.eup %2371 }
 0x350   :  { %v1249_v62 = vadd.f32 1.0, %v2372_v59  ;;  %v2374_v4 = vpop.eup %2373 }
 0x351   :  { %v1255_v5 = vmul.f32 %v2374_v4, %v1248_v55  ;;  %v2376_v52 = vpop.eup %2375 }
 0x352   :  { %v1254_v56 = vmul.f32 %v1252_v63, %v1249_v62  ;;  %v1250_v12 = vadd.f32 1.0, %v2376_v52 }
 0x354   :  { %v1256_v26 = vadd.f32 %v1255_v5, %v1254_v56  ;;  %v1258_v9 = vmul.f32 0.5, %v1250_v12 }
 0x356   :  { %v2865_v53 = vmul.f32 0.5, %v1256_v26 }
 0x358   :  { %2377 = vtanh.f32 %v2865_v53 }
 0x365   :  { %v2378_v7 = vpop.eup %2377 }
 0x366   :  { %v1260_v60 = vmul.f32 %v2378_v7, %v1258_v9  ;;  %v1371_v7 = vrot.slane %v2865_v53, 7 }
 0x368   :  { %v2870_v58 = vsel %vm1862_vm3, %v1861_v17, %v1260_v60  ;;  %v1261_v8 = vpack.c.bf16 %v1260_v60, %v1260_v60 }
 0x36a   :  { %v1263_v1 = vrot.slane %v1261_v8, 1 }
 0x36c   :  { %1298 = vmatmul.mubr.bf16.vlgmr.msra.gmra.mxu0 %v1263_v1  ;;  %1339 = vmatmul.mubr.bf16.vlgmr.msra.gmra.mxu1 %v1263_v1 }
 0x36d   :  { %1387 = vmatpush1.bf16.msra.mxu0 %v2619_v10  ;;  %1428 = vmatpush1.bf16.msra.mxu1 %v2664_v36 }
 0x36e   :  { %1388 = vmatprep.subr.bf16.mxu0 %v2622_v11  ;;  %1429 = vmatprep.subr.bf16.mxu1 %v2669_v38 }
 0x36f   :  { %1418 = vmatprep.mubr.bf16.mxu0 %v2556_v0  ;;  %1459 = vmatprep.mubr.bf16.mxu1 %v2556_v0 }
 0x371   :  { %1389 = vmatpush1.bf16.msra.mxu0 %v2625_v14  ;;  %1430 = vmatpush1.bf16.msra.mxu1 %v2678_v40 }
 0x372   :  { %1390 = vmatprep.subr.bf16.mxu0 %v2629_v15  ;;  %1431 = vmatprep.subr.bf16.mxu1 %v2681_v41 }
 0x375   :  { %1391 = vmatpush1.bf16.msra.mxu0 %v2631_v19  ;;  %1432 = vmatpush1.bf16.msra.mxu1 %v2686_v16 }
 0x376   :  { %1392 = vmatprep.subr.bf16.mxu0 %v2634_v21  ;;  %1433 = vmatprep.subr.bf16.mxu1 %v2690_v42 }
 0x379   :  { %1393 = vmatpush1.bf16.msra.mxu0 %v2637_v23  ;;  %1434 = vmatpush1.bf16.msra.mxu1 %v2696_v43 }
 0x37a   :  { %1394 = vmatprep.subr.bf16.mxu0 %v2639_v24  ;;  %1435 = vmatprep.subr.bf16.mxu1 %v2700_v44 }
 0x37d   :  { %1395 = vmatpush1.bf16.msra.mxu0 %v2646_v27  ;;  %1436 = vmatpush1.bf16.msra.mxu1 %v2704_v45 }
 0x37e   :  { %1396 = vmatprep.subr.bf16.mxu0 %v2649_v29  ;;  %1437 = vmatprep.subr.bf16.mxu1 %v2708_v46 }
 0x381   :  { %1397 = vmatpush1.bf16.msra.mxu0 %v2653_v31  ;;  %1438 = vmatpush1.bf16.msra.mxu1 %v2712_v47 }
 0x382   :  { %1398 = vmatprep.subr.bf16.mxu0 %v2656_v33  ;;  %1439 = vmatprep.subr.bf16.mxu1 %v2716_v48 }
 0x385   :  { %1399 = vmatpush1.bf16.msra.mxu0 %v2661_v35  ;;  %1440 = vmatpush1.bf16.msra.mxu1 %v2720_v49 }
 0x386   :  { %1400 = vmatprep.subr.bf16.mxu0 %v2666_v37  ;;  %1441 = vmatprep.subr.bf16.mxu1 %v2724_v50 }
 0x389   :  { %1401 = vmatpush1.bf16.msra.mxu0 %v2674_v39  ;;  %1442 = vmatpush1.bf16.msra.mxu1 %v2728_v51 }
 0x38a   :  { %1505 = vmatprep.subr.bf16.mxu0 %v2617_v6  ;;  %1546 = vmatprep.subr.bf16.mxu1 %v2658_v34 }
 0x42c   :  { %v1299_v30 = vpop.f32.mrf.mxu0  ;;  %v1340_v57 = vpop.f32.mrf.mxu1 }
 0x42d   :  { %v1351_v18 = vrot.slane %v1299_v30, 5  ;;  %v1353_v22 = vrot.slane %v1340_v57, 5 }
 0x42e   :  { %v1301_v25 = vpop.f32.mrf.mxu0  ;;  %v1342_v20 = vpop.f32.mrf.mxu1 }
 0x42f   :  { %v1359_v28 = vadd.f32 %v1351_v18, %v2763_v54  ;;  %v1352_v61 = vrot.slane %v1301_v25, 5  ;;  %v1361_v59 = vadd.f32 %v1353_v22, %v2767_v3  ;;  %v1354_v56 = vrot.slane %v1342_v20, 5 }
 0x430   :  { %v1303_v2 = vpop.f32.mrf.mxu0  ;;  %v1344_v55 = vpop.f32.mrf.mxu1 }
 0x431   :  { %2379 = vtanh.f32 %v1359_v28  ;;  %v1360_v62 = vadd.f32 %v1352_v61, %v2761_v32  ;;  %v1362_v5 = vadd.f32 %v1354_v56, %v2770_v13 }
 0x432   :  { %v1304_v63 = vpop.f32.mrf.mxu0  ;;  %v1345_v4 = vpop.f32.mrf.mxu1 }
 0x433   :  { %2381 = vtanh.f32 %v1360_v62 }
 0x434   :  { %2383 = vtanh.f32 %v1361_v59 }
 0x435   :  { %2385 = vtanh.f32 %v1362_v5 }
 0x43e   :  { %v2380_v26 = vpop.eup %2379 }
 0x43f   :  { %v1367_v52 = vadd.f32 1.0, %v2380_v26 }
 0x440   :  { %v2382_v12 = vpop.eup %2381 }
 0x441   :  { %v1368_v9 = vadd.f32 1.0, %v2382_v12  ;;  %v2384_v60 = vpop.eup %2383 }
 0x442   :  { %v1374_v8 = vmul.f32 %v2384_v60, %v1367_v52  ;;  %v2386_v57 = vpop.eup %2385 }
 0x443   :  { %v1373_v17 = vmul.f32 %v1371_v7, %v1368_v9  ;;  %v1369_v18 = vadd.f32 1.0, %v2386_v57 }
 0x445   :  { %v1375_v1 = vadd.f32 %v1374_v8, %v1373_v17  ;;  %v1377_v22 = vmul.f32 0.5, %v1369_v18 }
 0x447   :  { %v2911_v30 = vmul.f32 0.5, %v1375_v1 }
 0x449   :  { %2387 = vtanh.f32 %v2911_v30  ;;  %v1492_v60 = vrot.slane %v2911_v30, 7 }
 0x456   :  { %v2388_v25 = vpop.eup %2387 }
 0x457   :  { %v1379_v20 = vmul.f32 %v2388_v25, %v1377_v22 }
 0x459   :  { %v2915_v28 = vsel %vm1864_vm4, %v2870_v58, %v1379_v20  ;;  %v1380_v61 = vpack.c.bf16 %v1379_v20, %v1379_v20 }
 0x45b   :  { %v1382_v53 = vshrl.u32 %v1380_v61, 16 }
 0x45d   :  { %v1384_v2 = vrot.slane %v1382_v53, 1 }
 0x45f   :  { %1419 = vmatmul.mubr.bf16.vlgmr.msra.gmra.mxu0 %v1384_v2  ;;  %1460 = vmatmul.mubr.bf16.vlgmr.msra.gmra.mxu1 %v1384_v2 }
 0x460   :  { %1506 = vmatpush1.bf16.msra.mxu0 %v2619_v10  ;;  %1547 = vmatpush1.bf16.msra.mxu1 %v2664_v36 }
 0x461   :  { %1507 = vmatprep.subr.bf16.mxu0 %v2622_v11  ;;  %1548 = vmatprep.subr.bf16.mxu1 %v2669_v38 }
 0x462   :  { %1537 = vmatprep.mubr.bf16.mxu0 %v2556_v0  ;;  %1578 = vmatprep.mubr.bf16.mxu1 %v2556_v0 }
 0x464   :  { %1508 = vmatpush1.bf16.msra.mxu0 %v2625_v14  ;;  %1549 = vmatpush1.bf16.msra.mxu1 %v2678_v40 }
 0x465   :  { %1509 = vmatprep.subr.bf16.mxu0 %v2629_v15  ;;  %1550 = vmatprep.subr.bf16.mxu1 %v2681_v41 }
 0x468   :  { %1510 = vmatpush1.bf16.msra.mxu0 %v2631_v19  ;;  %1551 = vmatpush1.bf16.msra.mxu1 %v2686_v16 }
 0x469   :  { %1511 = vmatprep.subr.bf16.mxu0 %v2634_v21  ;;  %1552 = vmatprep.subr.bf16.mxu1 %v2690_v42 }
 0x46c   :  { %1512 = vmatpush1.bf16.msra.mxu0 %v2637_v23  ;;  %1553 = vmatpush1.bf16.msra.mxu1 %v2696_v43 }
 0x46d   :  { %1513 = vmatprep.subr.bf16.mxu0 %v2639_v24  ;;  %1554 = vmatprep.subr.bf16.mxu1 %v2700_v44 }
 0x470   :  { %1514 = vmatpush1.bf16.msra.mxu0 %v2646_v27  ;;  %1555 = vmatpush1.bf16.msra.mxu1 %v2704_v45 }
 0x471   :  { %1515 = vmatprep.subr.bf16.mxu0 %v2649_v29  ;;  %1556 = vmatprep.subr.bf16.mxu1 %v2708_v46 }
 0x474   :  { %1516 = vmatpush1.bf16.msra.mxu0 %v2653_v31  ;;  %1557 = vmatpush1.bf16.msra.mxu1 %v2712_v47 }
 0x475   :  { %1517 = vmatprep.subr.bf16.mxu0 %v2656_v33  ;;  %1558 = vmatprep.subr.bf16.mxu1 %v2716_v48 }
 0x478   :  { %1518 = vmatpush1.bf16.msra.mxu0 %v2661_v35  ;;  %1559 = vmatpush1.bf16.msra.mxu1 %v2720_v49 }
 0x479   :  { %1519 = vmatprep.subr.bf16.mxu0 %v2666_v37  ;;  %1560 = vmatprep.subr.bf16.mxu1 %v2724_v50 }
 0x47c   :  { %1520 = vmatpush1.bf16.msra.mxu0 %v2674_v39  ;;  %1561 = vmatpush1.bf16.msra.mxu1 %v2728_v51 }
 0x47d   :  { %1626 = vmatprep.subr.bf16.mxu0 %v2617_v6  ;;  %1667 = vmatprep.subr.bf16.mxu1 %v2658_v34 }
 0x51f   :  { %v1420_v10 = vpop.f32.mrf.mxu0  ;;  %v1461_v11 = vpop.f32.mrf.mxu1 }
 0x520   :  { %v1472_v14 = vrot.slane %v1420_v10, 4  ;;  %v1474_v15 = vrot.slane %v1461_v11, 4  ;;  %v2962_v11 = vld [vmem:[#allocation5 + $0xe0] ss:$16 sps:$4 sm:$0xff]  }
 0x521   :  { %v1422_v19 = vpop.f32.mrf.mxu0  ;;  %v1463_v21 = vpop.f32.mrf.mxu1 }
 0x522   :  { %v1480_v58 = vadd.f32 %v1472_v14, %v2763_v54  ;;  %v1473_v55 = vrot.slane %v1422_v19, 4  ;;  %v1482_v63 = vadd.f32 %v1474_v15, %v2767_v3  ;;  %v1475_v5 = vrot.slane %v1463_v21, 4  ;;  %v2966_v14 = vld [vmem:[#allocation5 + $0xc4] ss:$16 sps:$4 sm:$0xff]  }
 0x523   :  { %v1424_v59 = vpop.f32.mrf.mxu0  ;;  %v1465_v62 = vpop.f32.mrf.mxu1  ;;  %v2976_v15 = vld [vmem:[#allocation5 + $0xa4] ss:$16 sps:$4 sm:$0xff]  }
 0x524   :  { %2389 = vtanh.f32 %v1480_v58  ;;  %v1481_v4 = vadd.f32 %v1473_v55, %v2761_v32  ;;  %v1483_v26 = vadd.f32 %v1475_v5, %v2770_v13 }
 0x525   :  { %v1425_v56 = vpop.f32.mrf.mxu0  ;;  %v1466_v6 = vpop.f32.mrf.mxu1 }
 0x526   :  { %2391 = vtanh.f32 %v1481_v4 }
 0x527   :  { %2393 = vtanh.f32 %v1482_v63 }
 0x528   :  { %2395 = vtanh.f32 %v1483_v26 }
 0x531   :  { %v2390_v52 = vpop.eup %2389 }
 0x532   :  { %v1488_v12 = vadd.f32 1.0, %v2390_v52 }
 0x533   :  { %v2392_v9 = vpop.eup %2391 }
 0x534   :  { %v1489_v7 = vadd.f32 1.0, %v2392_v9  ;;  %v2394_v17 = vpop.eup %2393  ;;  %v2440_v9 = vld [vmem:[#allocation5 + $0xe8] ss:$16 sps:$4 sm:$0xff]  }
 0x535   :  { %v1495_v1 = vmul.f32 %v2394_v17, %v1488_v12  ;;  %v2396_v22 = vpop.eup %2395  ;;  %v2443_v17 = vld [vmem:[#allocation5 + $0xac] ss:$16 sps:$4 sm:$0xff]  }
 0x536   :  { %v1494_v8 = vmul.f32 %v1492_v60, %v1489_v7  ;;  %v1490_v25 = vadd.f32 1.0, %v2396_v22  ;;  %v2441_v7 = vld [vmem:[#allocation5 + $0xcc] ss:$16 sps:$4 sm:$0xff]   ;;  %v2442_v60 = vld [vmem:[#allocation5 + $0xc8] ss:$16 sps:$4 sm:$0xff]  }
 0x537   :  { %v2449_v22 = vld [vmem:[#allocation5 + $0x6c] ss:$16 sps:$4 sm:$0xff]  }
 0x538   :  { %v1496_v57 = vadd.f32 %v1495_v1, %v1494_v8  ;;  %v1498_v20 = vmul.f32 0.5, %v1490_v25  ;;  %v2444_v8 = vld [vmem:[#allocation5 + $0xa8] ss:$16 sps:$4 sm:$0xff]   ;;  %v2445_v1 = vld [vmem:[#allocation5 + $0x8c] ss:$16 sps:$4 sm:$0xff]  }
 0x539   :  { %v2450_v25 = vld [vmem:[#allocation5 + $0x60] ss:$16 sps:$4 sm:$0xff]  }
 0x53a   :  { %v2956_v18 = vmul.f32 0.5, %v1496_v57  ;;  %v2446_v57 = vld [vmem:[#allocation5 + $0x80] ss:$16 sps:$4 sm:$0xff]  }
 0x53c   :  { %2397 = vtanh.f32 %v2956_v18 }
 0x549   :  { %v2398_v61 = vpop.eup %2397 }
 0x54a   :  { %v1500_v53 = vmul.f32 %v2398_v61, %v1498_v20  ;;  %v2451_v20 = vld [vmem:[#allocation5 + $0x68] ss:$16 sps:$4 sm:$0xff]   ;;  %v2452_v61 = vld [vmem:[#allocation5 + $0x44] ss:$16 sps:$4 sm:$0xff]  }
 0x54c   :  { %v2960_v2 = vsel %vm1866_vm5, %v2915_v28, %v1500_v53  ;;  %v1501_v10 = vpack.c.bf16 %v1500_v53, %v1500_v53  ;;  %v2972_v28 = vld [vmem:[#allocation5 + $0xc0] ss:$16 sps:$4 sm:$0xff]   ;;  %v2453_v53 = vld [vmem:[#allocation5 + $0x4c] ss:$16 sps:$4 sm:$0xff]  }
 0x54e   :  { %v1503_v30 = vrot.slane %v1501_v10, 2  ;;  %v2455_v10 = vld [vmem:[#allocation5 + $0x48] ss:$16 sps:$4 sm:$0xff]  }
 0x550   :  { %1538 = vmatmul.mubr.bf16.vlgmr.msra.gmra.mxu0 %v1503_v30  ;;  %1579 = vmatmul.mubr.bf16.vlgmr.msra.gmra.mxu1 %v1503_v30  ;;  %v2456_v30 = vld [vmem:[#allocation5 + $0x24] ss:$16 sps:$4 sm:$0xff]  }
 0x551   :  { %1627 = vmatpush1.bf16.msra.mxu0 %v2962_v11  ;;  %1668 = vmatpush1.bf16.msra.mxu1 %v2664_v36  ;;  %v2980_v36 = vld [vmem:[#allocation5 + $0xa0] ss:$16 sps:$4 sm:$0xff]  }
 0x552   :  { %1628 = vmatprep.subr.bf16.mxu0 %v2966_v14  ;;  %1669 = vmatprep.subr.bf16.mxu1 %v2669_v38  ;;  %v2984_v38 = vld [vmem:[#allocation5 + $0x84] ss:$16 sps:$4 sm:$0xff]  }
 0x553   :  { %1658 = vmatprep.mubr.bf16.mxu0 %v2556_v0  ;;  %1699 = vmatprep.mubr.bf16.mxu1 %v2556_v0 }
 0x555   :  { %1629 = vmatpush1.bf16.msra.mxu0 %v2972_v28  ;;  %1670 = vmatpush1.bf16.msra.mxu1 %v2678_v40 }
 0x556   :  { %1630 = vmatprep.subr.bf16.mxu0 %v2976_v15  ;;  %1671 = vmatprep.subr.bf16.mxu1 %v2681_v41 }
 0x559   :  { %1631 = vmatpush1.bf16.msra.mxu0 %v2980_v36  ;;  %1672 = vmatpush1.bf16.msra.mxu1 %v2686_v16 }
 0x55a   :  { %1632 = vmatprep.subr.bf16.mxu0 %v2984_v38  ;;  %1673 = vmatprep.subr.bf16.mxu1 %v2690_v42 }
 0x55d   :  { %1633 = vmatpush1.bf16.msra.mxu0 %v2637_v23  ;;  %1674 = vmatpush1.bf16.msra.mxu1 %v2696_v43  ;;  %v2439_v23 = vld [vmem:[#allocation5 + $0xe4] ss:$16 sps:$4 sm:$0xff]  }
 0x55e   :  { %1634 = vmatprep.subr.bf16.mxu0 %v2639_v24  ;;  %1675 = vmatprep.subr.bf16.mxu1 %v2700_v44 }
 0x561   :  { %1635 = vmatpush1.bf16.msra.mxu0 %v2646_v27  ;;  %1676 = vmatpush1.bf16.msra.mxu1 %v2704_v45 }
 0x562   :  { %1636 = vmatprep.subr.bf16.mxu0 %v2649_v29  ;;  %1677 = vmatprep.subr.bf16.mxu1 %v2708_v46 }
 0x565   :  { %1637 = vmatpush1.bf16.msra.mxu0 %v2653_v31  ;;  %1678 = vmatpush1.bf16.msra.mxu1 %v2712_v47 }
 0x566   :  { %1638 = vmatprep.subr.bf16.mxu0 %v2656_v33  ;;  %1679 = vmatprep.subr.bf16.mxu1 %v2716_v48 }
 0x569   :  { %1639 = vmatpush1.bf16.msra.mxu0 %v2661_v35  ;;  %1680 = vmatpush1.bf16.msra.mxu1 %v2720_v49 }
 0x56a   :  { %1640 = vmatprep.subr.bf16.mxu0 %v2666_v37  ;;  %1681 = vmatprep.subr.bf16.mxu1 %v2724_v50  ;;  %v1611_v50 = vrot.slane %v2956_v18, 7  ;;  %v2447_v18 = vld [vmem:[#allocation5 + $0x88] ss:$16 sps:$4 sm:$0xff]  }
 0x56d   :  { %1641 = vmatpush1.bf16.msra.mxu0 %v2674_v39  ;;  %1682 = vmatpush1.bf16.msra.mxu1 %v2728_v51 }
 0x56e   :  { %1745 = vmatprep.subr.bf16.mxu0 %v2439_v23  ;;  %1786 = vmatprep.subr.bf16.mxu1 %v2658_v34 }
 0x610   :  { %v1539_v24 = vpop.f32.mrf.mxu0  ;;  %v1580_v27 = vpop.f32.mrf.mxu1 }
 0x611   :  { %v1591_v29 = vrot.slane %v1539_v24, 3  ;;  %v1593_v31 = vrot.slane %v1580_v27, 3 }
 0x612   :  { %v1541_v33 = vpop.f32.mrf.mxu0  ;;  %v1582_v35 = vpop.f32.mrf.mxu1 }
 0x613   :  { %v1599_v40 = vadd.f32 %v1591_v29, %v2763_v54  ;;  %v1592_v41 = vrot.slane %v1541_v33, 3  ;;  %v1601_v39 = vadd.f32 %v1593_v31, %v2767_v3  ;;  %v1594_v34 = vrot.slane %v1582_v35, 3 }
 0x614   :  { %v1543_v37 = vpop.f32.mrf.mxu0  ;;  %v1584_v16 = vpop.f32.mrf.mxu1 }
 0x615   :  { %2399 = vtanh.f32 %v1599_v40  ;;  %v1600_v42 = vadd.f32 %v1592_v41, %v2761_v32  ;;  %v1602_v45 = vadd.f32 %v1594_v34, %v2770_v13 }
 0x616   :  { %v1544_v43 = vpop.f32.mrf.mxu0  ;;  %v1585_v44 = vpop.f32.mrf.mxu1 }
 0x617   :  { %2401 = vtanh.f32 %v1600_v42 }
 0x618   :  { %2403 = vtanh.f32 %v1601_v39 }
 0x619   :  { %2405 = vtanh.f32 %v1602_v45 }
 0x622   :  { %v2400_v46 = vpop.eup %2399 }
 0x623   :  { %v1607_v47 = vadd.f32 1.0, %v2400_v46 }
 0x624   :  { %v2402_v48 = vpop.eup %2401 }
 0x625   :  { %v1608_v49 = vadd.f32 1.0, %v2402_v48  ;;  %v2404_v19 = vpop.eup %2403 }
 0x626   :  { %v1614_v58 = vmul.f32 %v2404_v19, %v1607_v47  ;;  %v2406_v62 = vpop.eup %2405 }
 0x627   :  { %v1613_v21 = vmul.f32 %v1611_v50, %v1608_v49  ;;  %v1609_v63 = vadd.f32 1.0, %v2406_v62 }
 0x629   :  { %v1615_v55 = vadd.f32 %v1614_v58, %v1613_v21  ;;  %v1617_v4 = vmul.f32 0.5, %v1609_v63 }
 0x62b   :  { %v3012_v59 = vmul.f32 0.5, %v1615_v55 }
 0x62d   :  { %2407 = vtanh.f32 %v3012_v59  ;;  %v1732_v48 = vrot.slane %v3012_v59, 7 }
 0x63a   :  { %v2408_v56 = vpop.eup %2407 }
 0x63b   :  { %v1619_v6 = vmul.f32 %v2408_v56, %v1617_v4 }
 0x63d   :  { %v1620_v5 = vpack.c.bf16 %v1619_v6, %v1619_v6  ;;  %v3016_v26 = vsel %vm1868_vm6, %v2960_v2, %v1619_v6  ;;  %v2454_v2 = vld [vmem:[#allocation5 + $0x40] ss:$16 sps:$4 sm:$0xff]  }
 0x63f   :  { %v1622_v52 = vshrl.u32 %v1620_v5, 16 }
 0x641   :  { %v1624_v12 = vrot.slane %v1622_v52, 2  ;;  %v2341_v52 = vld [vmem:[#allocation7 + $0x38] sm:$0xff]  }
 0x643   :  { %1659 = vmatmul.mubr.bf16.vlgmr.msra.gmra.mxu0 %v1624_v12  ;;  %1700 = vmatmul.mubr.bf16.vlgmr.msra.gmra.mxu1 %v1624_v12  ;;  %v2557_v12 = vmov 0.0  }
 0x644   :  { %1746 = vmatpush1.bf16.msra.mxu0 %v2962_v11  ;;  %1787 = vmatpush1.bf16.msra.mxu1 %v2440_v9  ;;  %v2457_v11 = vld [vmem:[#allocation5 + $0x2c] ss:$16 sps:$4 sm:$0xff]   ;;  %v2342_v9 = vld [vmem:[#allocation7 + $0x30] sm:$0xff]  }
 0x645   :  { %1747 = vmatprep.subr.bf16.mxu0 %v2966_v14  ;;  %1788 = vmatprep.subr.bf16.mxu1 %v2441_v7  ;;  %v2458_v14 = vld [vmem:[#allocation5 + $0x20] ss:$16 sps:$4 sm:$0xff]   ;;  %v2343_v7 = vld [vmem:[#allocation7 + $0x28] sm:$0xff]  }
 0x646   :  { %1777 = vmatprep.mubr.bf16.mxu0 %v2556_v0  ;;  %1818 = vmatprep.mubr.bf16.mxu1 %v2556_v0  ;;  %v2448_v0 = vld [vmem:[#allocation5 + $0x64] ss:$16 sps:$4 sm:$0xff]  }
 0x648   :  { %1748 = vmatpush1.bf16.msra.mxu0 %v2972_v28  ;;  %1789 = vmatpush1.bf16.msra.mxu1 %v2442_v60  ;;  %v2459_v28 = vld [vmem:[#allocation5 + $0x28] ss:$16 sps:$4 sm:$0xff]   ;;  %v2344_v60 = vld [vmem:[#allocation7 + $0x20] sm:$0xff]  }
 0x649   :  { %1749 = vmatprep.subr.bf16.mxu0 %v2976_v15  ;;  %1790 = vmatprep.subr.bf16.mxu1 %v2443_v17  ;;  %v2460_v15 = vld [vmem:[#allocation5 + $0x4] ss:$16 sps:$4 sm:$0xff]   ;;  %v2345_v17 = vld [vmem:[#allocation7 + $0x18] sm:$0xff]  }
 0x64c   :  { %1750 = vmatpush1.bf16.msra.mxu0 %v2980_v36  ;;  %1791 = vmatpush1.bf16.msra.mxu1 %v2444_v8  ;;  %v2461_v36 = vld [vmem:[#allocation5 + $0xc] ss:$16 sps:$4 sm:$0xff]  }
 0x64d   :  { %1751 = vmatprep.subr.bf16.mxu0 %v2984_v38  ;;  %1792 = vmatprep.subr.bf16.mxu1 %v2445_v1  ;;  %v2462_v38 = vld [vmem:[#allocation5] ss:$16 sps:$4 sm:$0xff]   ;;  %v2347_v8 = vld [vmem:[#allocation7 + $0x8] sm:$0xff]  }
 0x64e   :  { %v2348_v1 = vld [vmem:[#allocation7] sm:$0xff]  }
 0x650   :  { %1752 = vmatpush1.bf16.msra.mxu0 %v2446_v57  ;;  %1793 = vmatpush1.bf16.msra.mxu1 %v2447_v18 }
 0x651   :  { %1753 = vmatprep.subr.bf16.mxu0 %v2448_v0  ;;  %1794 = vmatprep.subr.bf16.mxu1 %v2449_v22 }
 0x654   :  { %1754 = vmatpush1.bf16.msra.mxu0 %v2450_v25  ;;  %1795 = vmatpush1.bf16.msra.mxu1 %v2451_v20 }
 0x655   :  { %1755 = vmatprep.subr.bf16.mxu0 %v2452_v61  ;;  %1796 = vmatprep.subr.bf16.mxu1 %v2453_v53 }
 0x658   :  { %1756 = vmatpush1.bf16.msra.mxu0 %v2454_v2  ;;  %1797 = vmatpush1.bf16.msra.mxu1 %v2455_v10 }
 0x659   :  { %1757 = vmatprep.subr.bf16.mxu0 %v2456_v30  ;;  %1798 = vmatprep.subr.bf16.mxu1 %v2457_v11 }
 0x65c   :  { %1758 = vmatpush1.bf16.msra.mxu0 %v2458_v14  ;;  %1799 = vmatpush1.bf16.msra.mxu1 %v2459_v28 }
 0x65d   :  { %1759 = vmatprep.subr.bf16.mxu0 %v2460_v15  ;;  %1800 = vmatprep.subr.bf16.mxu1 %v2461_v36 }
 0x660   :  { %1760 = vmatpush1.bf16.msra.mxu0 %v2462_v38  ;;  %1801 = vmatpush1.bf16.msra.mxu1 %v2728_v51 }
 0x661   :  { %2145 = vmatprep.subr.bf16.mxu0 %v2557_v12 }
 0x703   :  { %v1660_v23 = vpop.f32.mrf.mxu0  ;;  %v1701_v24 = vpop.f32.mrf.mxu1 }
 0x704   :  { %v1712_v27 = vrot.slane %v1660_v23, 2  ;;  %v1714_v29 = vrot.slane %v1701_v24, 2 }
 0x705   :  { %v1662_v31 = vpop.f32.mrf.mxu0  ;;  %v1703_v33 = vpop.f32.mrf.mxu1 }
 0x706   :  { %v1720_v35 = vadd.f32 %v1712_v27, %v2763_v54  ;;  %v1713_v40 = vrot.slane %v1662_v31, 2  ;;  %v1722_v16 = vadd.f32 %v1714_v29, %v2767_v3  ;;  %v1715_v51 = vrot.slane %v1703_v33, 2 }
 0x707   :  { %v1664_v41 = vpop.f32.mrf.mxu0  ;;  %v1705_v37 = vpop.f32.mrf.mxu1 }
 0x708   :  { %2409 = vtanh.f32 %v1720_v35  ;;  %v1721_v39 = vadd.f32 %v1713_v40, %v2761_v32  ;;  %v1723_v44 = vadd.f32 %v1715_v51, %v2770_v13 }
 0x709   :  { %v1665_v42 = vpop.f32.mrf.mxu0  ;;  %v1706_v43 = vpop.f32.mrf.mxu1 }
 0x70a   :  { %2411 = vtanh.f32 %v1721_v39  ;;  %v2127_v42 = vld [vmem:[%s3056_s5] ss:$0 sm:$0xff]  ;;  %s2523_s5 = scalar_lea.vmem %s2003_s20, 128 }
 0x70b   :  { %2413 = vtanh.f32 %v1722_v16  ;;  %p2524_p1 = scmp.ne.s32.totalorder %s2003_s20, %s2523_s5  ;;  %p2529_p3 = scmp.lt.s32.totalorder %s2523_s5, %s2523_s5 }
 0x70c   :  { %2415 = vtanh.f32 %v1723_v44 }
 0x70d   :  { %p2530_p4 = por %p2529_p3, %p2528_p2 }
 0x70f   :  { %p2531_p5 = pnand %p2530_p4, %p2524_p1 }
 0x715   :  { %v2410_v34 = vpop.eup %2409 }
 0x716   :  { %v1728_v45 = vadd.f32 1.0, %v2410_v34 }
 0x717   :  { %v2412_v46 = vpop.eup %2411 }
 0x718   :  { %v1729_v47 = vadd.f32 1.0, %v2412_v46  ;;  %v2414_v49 = vpop.eup %2413 }
 0x719   :  { %v1735_v19 = vmul.f32 %v2414_v49, %v1728_v45  ;;  %v2416_v55 = vpop.eup %2415 }
 0x71a   :  { %v1734_v50 = vmul.f32 %v1732_v48, %v1729_v47  ;;  %v1730_v62 = vadd.f32 1.0, %v2416_v55 }
 0x71c   :  { %v1736_v21 = vadd.f32 %v1735_v19, %v1734_v50  ;;  %v1738_v63 = vmul.f32 0.5, %v1730_v62 }
 0x71e   :  { %v3032_v58 = vmul.f32 0.5, %v1736_v21 }
 0x720   :  { %2417 = vtanh.f32 %v3032_v58 }
 0x72d   :  { %v2418_v4 = vpop.eup %2417 }
 0x72e   :  { %v1740_v56 = vmul.f32 %v2418_v4, %v1738_v63 }
 0x730   :  { %v1741_v6 = vpack.c.bf16 %v1740_v56, %v1740_v56  ;;  %v3037_v5 = vsel %vm556_vm0, %v3016_v26, %v1740_v56  ;;  %v2346_v26 = vld [vmem:[#allocation7 + $0x10] sm:$0xff]  }
 0x732   :  { %v1743_v59 = vrot.slane %v1741_v6, 3 }
 0x734   :  { %1778 = vmatmul.mubr.bf16.vlgmr.msra.gmra.mxu0 %v1743_v59  ;;  %1819 = vmatmul.mubr.bf16.vlgmr.msra.gmra.mxu1 %v1743_v59 }
 0x735   :  { %2146 = vmatpush3.bf16.msra.mxu0 %v2341_v52  ;;  %2161 = vmatprep.mubr.msk.bf16.mxu0 %vm2558_vm7, %v2557_v12 }
 0x736   :  { %2147 = vmatprep.subr.bf16.mxu0 %v2557_v12 }
 0x739   :  { %2148 = vmatpush3.bf16.msra.mxu0 %v2342_v9 }
 0x73a   :  { %2149 = vmatprep.subr.bf16.mxu0 %v2557_v12 }
 0x73d   :  { %2150 = vmatpush3.bf16.msra.mxu0 %v2343_v7 }
 0x73e   :  { %2151 = vmatprep.subr.bf16.mxu0 %v2557_v12 }
 0x741   :  { %2152 = vmatpush3.bf16.msra.mxu0 %v2344_v60 }
 0x742   :  { %2153 = vmatprep.subr.bf16.mxu0 %v2557_v12 }
 0x745   :  { %2154 = vmatpush3.bf16.msra.mxu0 %v2345_v17 }
 0x746   :  { %2155 = vmatprep.subr.bf16.mxu0 %v2557_v12 }
 0x749   :  { %2156 = vmatpush3.bf16.msra.mxu0 %v2346_v26 }
 0x74a   :  { %2157 = vmatprep.subr.bf16.mxu0 %v2557_v12 }
 0x74d   :  { %2158 = vmatpush3.bf16.msra.mxu0 %v2347_v8 }
 0x74e   :  { %2159 = vmatprep.subr.bf16.mxu0 %v2557_v12 }
 0x751   :  { %2160 = vmatpush3.bf16.msra.mxu0 %v2348_v1 }
 0x7f4   :  { %v1779_v57 = vpop.f32.mrf.mxu0  ;;  %v1820_v18 = vpop.f32.mrf.mxu1 }
 0x7f5   :  { %v1831_v0 = vrot.slane %v1779_v57, 1  ;;  %v1833_v22 = vrot.slane %v1820_v18, 1 }
 0x7f6   :  { %v1781_v25 = vpop.f32.mrf.mxu0  ;;  %v1822_v20 = vpop.f32.mrf.mxu1 }
 0x7f7   :  { %v1839_v61 = vadd.f32 %v1831_v0, %v2763_v54  ;;  %v1832_v53 = vrot.slane %v1781_v25, 1  ;;  %v1841_v30 = vadd.f32 %v1833_v22, %v2767_v3  ;;  %v1834_v15 = vrot.slane %v1822_v20, 1 }
 0x7f8   :  { %v1783_v2 = vpop.f32.mrf.mxu0  ;;  %v1824_v10 = vpop.f32.mrf.mxu1  ;;  %v1851_v54 = vrot.slane %v3032_v58, 7 }
 0x7f9   :  { %2419 = vtanh.f32 %v1839_v61  ;;  %v1840_v11 = vadd.f32 %v1832_v53, %v2761_v32  ;;  %v1842_v36 = vadd.f32 %v1834_v15, %v2770_v13 }
 0x7fa   :  { %v1784_v14 = vpop.f32.mrf.mxu0  ;;  %v1825_v28 = vpop.f32.mrf.mxu1 }
 0x7fb   :  { %2421 = vtanh.f32 %v1840_v11 }
 0x7fc   :  { %2423 = vtanh.f32 %v1841_v30 }
 0x7fd   :  { %2425 = vtanh.f32 %v1842_v36 }
 0x806   :  { %v2420_v38 = vpop.eup %2419 }
 0x807   :  { %v1847_v23 = vadd.f32 1.0, %v2420_v38 }
 0x808   :  { %v2422_v24 = vpop.eup %2421 }
 0x809   :  { %v1848_v27 = vadd.f32 1.0, %v2422_v24  ;;  %v2424_v29 = vpop.eup %2423 }
 0x80a   :  { %v1854_v33 = vmul.f32 %v2424_v29, %v1847_v23  ;;  %v2426_v32 = vpop.eup %2425 }
 0x80b   :  { %v1853_v31 = vmul.f32 %v1851_v54, %v1848_v27  ;;  %v1849_v40 = vadd.f32 1.0, %v2426_v32 }
 0x80d   :  { %v1855_v3 = vadd.f32 %v1854_v33, %v1853_v31  ;;  %v1857_v41 = vmul.f32 0.5, %v1849_v40 }
 0x80f   :  { %v1856_v35 = vmul.f32 0.5, %v1855_v3 }
 0x811   :  { %2427 = vtanh.f32 %v1856_v35 }
 0x81e   :  { %v2428_v37 = vpop.eup %2427 }
 0x81f   :  { %v1859_v16 = vmul.f32 %v2428_v37, %v1857_v41 }
 0x821   :  { %v1872_v13 = vsel %vm1871_vm8, %v3037_v5, %v1859_v16 }
 0x822   :  { %v1873_v39 = vpack.c.bf16 %v1872_v13, %v1872_v13 }
 0x824   :  { %2162 = vmatmul.mubr.bf16.vlgmr.msra.gmra.mxu0 %v1873_v39 }
 0x8e4   :  { %v1979_v43 = vpop.f32.mrf.mxu0 }
 0x8e5   :  { %v1980_v51 = vadd.f32 %v2127_v42, %v1979_v43 }
 0x8e6   :  { %v2163_v44 = vpop.f32.mrf.mxu0 }
 0x8e7   :  { %1985 = vmax.xlane.f32.xlu0 %v1980_v51 }
 0x8e8   :  { %v1982_v34 = vpop.f32.mrf.mxu0 }
 0x8ea   :  { %v2164_v45 = vpop.f32.mrf.mxu0 }
 0x970   :  { %v1986_v46 = vpop.xlane.xlu0 %1985 }
 0x971   :  { %v1987_v47 = vsub.f32 %v1980_v51, %v1986_v46 }
 0x973   :  { %v1988_v48 = vmul.f32 1.442695, %v1987_v47 }
 0x975   :  { %2429 = vpow2.f32 %v1988_v48 }
 0x982   :  { %v2430_v49 = vpop.eup %2429 }
 0x983   :  { %1990 = vadd.xlane.f32.xlu0 %v2430_v49 }
 0xa0c   :  { %v1991_v50 = vpop.xlane.xlu0 %1990 }
 0xa0d   :  { %2431 = vlog2.f32 %v1991_v50 }
 0xa1a   :  { %v2432_v19 = vpop.eup %2431 }
 0xa1b   :  { %v1993_v21 = vmul.f32 0.6931472, %v2432_v19 }
 0xa1d   :  { %v1994_v58 = vsub.f32 %v1987_v47, %v1993_v21 }
 0xa1f   :  { %1995 = vst [vmem:[#allocation8] sm:$0xff] %v1994_v58 }
 0xa20   :  { %2534 = shalt.err (!%p2531_p5)
}
 0xa21   :  { %2005 = dma.vmem_to_hbm [thread:$0]  %s2003_s20, 128, %s3057_s6, [#allocation4]  }
 0xa22   :  { %2547 = dma.done.wait [#allocation4], 128  }
 0xa23   :  { %2548 = vsyncadd [#allocation4], 4294967168 }
 0xa24   :  { %2009 = vsyncpa [#allocation3], 1 }
 0xa25   :  { %2010 = vsyncpa [#allocation6], 1 }
 0xa26   :  { %2011 = vsyncpa [#allocation4], 1 }

</bundles_post_ra>
